<compile_context>
chip_gen: v7x
topology: tpu7x:2x2x1
jax: 0.10.0
libtpu: 0.0.40
codegen_flags: <defaults>
</compile_context>

<pallas_src>
import functools

import numpy as np

import jax
import jax.numpy as jnp
from jax.experimental import pallas as pl
from jax.experimental.pallas import tpu as pltpu

NUM_LAYERS = 3     # num_attention_layers in SoftQNetwork.__init__
HIDDEN = 256       # AttentionLayer hidden_dim (folded away on the host)
FC_HIDDEN = 256    # fc_hidden_dim


def _softq_kernel(coef_ref,                      # SMEM (L, 4): wq.wk, wq.bk, bq.wk, bq.bk
                  obs_ref, act_ref, mask_ref,    # VMEM (N, TB) f32, (A, TB) f32, (N*N, TB) bf16
                  aT_ref, ab_ref,                # VMEM (L, N, 2N), (L, N, 1)
                  w1_ref, b1_ref,                # VMEM (F, N+A), (F, 1)
                  w2_ref, b2_ref,                # VMEM (F, F) bf16, (F, 1)
                  w3_ref, b3_ref,                # VMEM (1, F), (1, 1)
                  out_ref,                       # VMEM (1, TB)  -- lane-dense output slab
                  *, attn_dtype):
    num_layers, n, _ = aT_ref.shape
    tb = obs_ref.shape[1]

    xT = obs_ref[...]                            # (N, TB) f32 -- batch on the lane axis
    # bf16 0/1 mask streamed from HBM; upcast once (2-D, layout-trivial reshape after).
    mask = mask_ref[...].astype(jnp.float32).reshape(n, n, tb).astype(attn_dtype)

    for layer in range(num_layers):
        c_qk = coef_ref[layer, 0]
        c_qb = coef_ref[layer, 1]
        c_bq = coef_ref[layer, 2]
        c_bb = coef_ref[layer, 3]

        # scores[i,j,b] = x_j*(c_qk*x_i + c_bq) + (c_qb*x_i + c_bb); multiplicative mask
        # exactly as in the module (softmax(scores * mask), dim over i == axis 0 here).
        u = (c_qk * xT + c_bq).astype(attn_dtype)            # (N, TB)
        v = (c_qb * xT + c_bb).astype(attn_dtype)            # (N, TB)
        xj = xT.astype(attn_dtype)[None, :, :]               # (1, N, TB)
        masked = (u[:, None, :] * xj + v[:, None, :]) * mask  # (N, N, TB), fused expression

        m = jnp.max(masked, axis=0, keepdims=True)           # (1, N, TB)
        e = jnp.exp(masked - m)                               # (N, N, TB)
        denom = jnp.sum(e, axis=0, dtype=jnp.float32)         # (N, TB), f32 accumulation
        r = pl.reciprocal(denom, approx=True)                 # EUP slot; per-column scale

        # softmax weights are never materialized: fold r into per-(j,b) factors.
        xr = (xT * r).astype(attn_dtype)[None, :, :]          # (1, N, TB)
        rb = r.astype(attn_dtype)[None, :, :]                 # (1, N, TB)
        sx = jnp.sum(e * xr, axis=1, dtype=jnp.float32)       # (N, TB): sum_j soft*x_j
        s1 = jnp.sum(e * rb, axis=1, dtype=jnp.float32)       # (N, TB): sum_j soft

        # out_fc(flatten(soft @ V)) as a single (N, 2N) @ (2N, TB) dot.
        sxs1 = jnp.concatenate([sx, s1], axis=0)              # (2N, TB)
        xT = (jnp.dot(aT_ref[layer], sxs1, preferred_element_type=jnp.float32)
              + ab_ref[layer])                                # (N, TB)

    # fc head on concat(obs', action): single fused (F, N+A) dot.
    h_in = jnp.concatenate([xT, act_ref[...]], axis=0)        # (N+A, TB)
    h1 = jnp.maximum(jnp.dot(w1_ref[...], h_in, preferred_element_type=jnp.float32)
                     + b1_ref[...], 0.0).astype(jnp.bfloat16)  # (F, TB) bf16 directly
    # dominant matmul: bf16 operands (w2 pre-cast on host), f32 accumulation
    h2 = jnp.maximum(jnp.dot(w2_ref[...], h1, preferred_element_type=jnp.float32)
                     + b2_ref[...], 0.0)                       # (F, TB)
    out_ref[...] = (jnp.dot(w3_ref[...], h2, preferred_element_type=jnp.float32)
                    + b3_ref[...])                             # (1, TB)


def soft_q_network(obs, action, mask, params, *, block_b=2048, attn_dtype=jnp.float32):
    """Pallas SoftQNetwork forward: obs (B,N), action (B,A), mask (B,N,N) -> (B,1)."""
    B, N = obs.shape
    A = action.shape[1]
    block_b = max(128, (int(block_b) // 128) * 128)

    # batch-last (lane-dense) layouts for the kernel -- pure layout plumbing
    obs_t = obs.T                                   # (N, B)
    act_t = action.T                                # (A, B)
    # mask as a 2-D bf16 slab (row = i*N + j): exact 0/1, halves streamed HBM bytes
    mask_t = jnp.transpose(mask, (1, 2, 0)).reshape(N * N, B).astype(jnp.bfloat16)

    # batch tile: multiple of 128 lanes; cap so batches spanning >1 tile produce
    # >=2 grid steps (keeps both v7x TensorCores busy under "parallel").
    tb_target = max(128, pl.cdiv(pl.cdiv(B, 2), 128) * 128)
    tb = max(128, min(block_b, tb_target))
    pad_b = pl.cdiv(B, tb) * tb
    if pad_b != B:
        pad = pad_b - B
        obs_t = jnp.pad(obs_t, ((0, 0), (0, pad)))
        act_t = jnp.pad(act_t, ((0, 0), (0, pad)))
        mask_t = jnp.pad(mask_t, ((0, 0), (0, pad)))

    def resident(arr):                              # whole array, same block every step
        nd = arr.ndim
        return pl.BlockSpec(arr.shape, lambda i, _n=nd: (0,) * _n)

    in_specs = [
        pl.BlockSpec(memory_space=pltpu.MemorySpace.SMEM),      # coef scalars (L, 4)
        pl.BlockSpec((N, tb), lambda i: (0, i)),                # obs_t
        pl.BlockSpec((A, tb), lambda i: (0, i)),                # act_t
        pl.BlockSpec((N * N, tb), lambda i: (0, i)),            # mask_t (bf16)
        resident(params['aT']), resident(params['ab']),
        resident(params['w1c_t']), resident(params['b1_t']),
        resident(params['w2_t']), resident(params['b2_t']),
        resident(params['w3_t']), resident(params['b3_t']),
    ]

    kernel = functools.partial(_softq_kernel, attn_dtype=attn_dtype)
    out_t = pl.pallas_call(
        kernel,
        grid=(pad_b // tb,),
        in_specs=in_specs,
        out_specs=pl.BlockSpec((1, tb), lambda i: (0, i)),
        out_shape=jax.ShapeDtypeStruct((1, pad_b), jnp.float32),
        compiler_params=pltpu.CompilerParams(
            dimension_semantics=("parallel",),       # shard batch tiles across TCs (v7x)
            vmem_limit_bytes=32 * 1024 * 1024,       # measured footprint <=~12 MiB @ TB=2048
        ),
    )(params['coef'], obs_t, act_t, mask_t,
      params['aT'], params['ab'],
      params['w1c_t'], params['b1_t'],
      params['w2_t'], params['b2_t'],
      params['w3_t'], params['b3_t'])

    return out_t[0, :B][:, None]                    # (B, 1)


def init_params(key, num_obs, num_act, hidden=HIDDEN, fc_hidden=FC_HIDDEN,
                num_layers=NUM_LAYERS):
    """Deterministic synthetic parameters mirroring the PyTorch module's shapes."""
    ks = jax.random.split(key, 9)
    f32 = jnp.float32
    # per layer: W_q, W_k, W_v, b_q, b_k, b_v (each torch.randn((1,1,H)) -> stored as (H,))
    qkv = jax.random.normal(ks[0], (num_layers, 6, hidden), f32)
    fan_att = num_obs * hidden
    # out_fc: Linear(N*H, N); stored pre-transposed & unflattened: att_w[l,i,h,n] = W[n, i*H+h]
    att_w = jax.random.normal(ks[1], (num_layers, num_obs, hidden, num_obs), f32) / np.sqrt(fan_att)
    att_b = jax.random.normal(ks[2], (num_layers, num_obs), f32) / np.sqrt(fan_att)
    fan1 = num_obs + num_act
    w1 = jax.random.normal(ks[3], (fan1, fc_hidden), f32) / np.sqrt(fan1)
    b1 = jax.random.normal(ks[4], (fc_hidden,), f32) / np.sqrt(fan1)
    w2 = jax.random.normal(ks[5], (fc_hidden, fc_hidden), f32) / np.sqrt(fc_hidden)
    b2 = jax.random.normal(ks[6], (fc_hidden,), f32) / np.sqrt(fc_hidden)
    w3 = jax.random.normal(ks[7], (fc_hidden, 1), f32) / np.sqrt(fc_hidden)
    b3 = jax.random.normal(ks[8], (1,), f32) / np.sqrt(fc_hidden)
    return dict(qkv=qkv, att_w=att_w, att_b=att_b,
                w1=w1, b1=b1, w2=w2, b2=b2, w3=w3, b3=b3)


def prepare_kernel_params(raw, num_obs):
    """Host-side, one-time folding of the rank-1 Q/K/V structure into tiny tensors."""
    wq, wk, wv = raw['qkv'][:, 0], raw['qkv'][:, 1], raw['qkv'][:, 2]
    bq, bk, bv = raw['qkv'][:, 3], raw['qkv'][:, 4], raw['qkv'][:, 5]
    # scores[b,i,j] = c_qk x_i x_j + c_qb x_i + c_bq x_j + c_bb   (4 scalars per layer)
    coef = jnp.stack([jnp.sum(wq * wk, -1), jnp.sum(wq * bk, -1),
                      jnp.sum(bq * wk, -1), jnp.sum(bq * bk, -1)], axis=-1)    # (L, 4)
    # out_fc(flatten(soft@V))[b,n] = sum_i sx[b,i] A_x[i,n] + sum_i s1[b,i] A_1[i,n] + b[n]
    # kernel works batch-last with sx/s1 stacked -> store [A_x^T | A_1^T] concatenated.
    axT = jnp.einsum('lh,lihn->lni', wv, raw['att_w'])   # (L, N, N)
    a1T = jnp.einsum('lh,lihn->lni', bv, raw['att_w'])   # (L, N, N)
    aT = jnp.concatenate([axT, a1T], axis=-1)            # (L, N, 2N)
    ab = raw['att_b'][:, :, None]                        # (L, N, 1)
    w1c_t = raw['w1'].T                                  # (F, N+A): obs cols then act cols
    b1_t = raw['b1'][:, None]                            # (F, 1)
    w2_t = raw['w2'].T.astype(jnp.bfloat16)              # (F, F) bf16 for the MXU
    b2_t = raw['b2'][:, None]                            # (F, 1)
    w3_t = raw['w3'].T                                   # (1, F)
    b3_t = raw['b3'][:, None]                            # (1, 1)
    return dict(coef=coef, aT=aT, ab=ab,
                w1c_t=w1c_t, b1_t=b1_t,
                w2_t=w2_t, b2_t=b2_t, w3_t=w3_t, b3_t=b3_t)


def soft_q_reference(obs, action, mask, raw):
    """Pure-JAX f32 reference mirroring the PyTorch forward exactly."""
    L, _, H = raw['qkv'].shape
    B, N = obs.shape
    x = obs
    for l in range(L):
        wq, wk, wv, bq, bk, bv = (raw['qkv'][l, j] for j in range(6))
        xe = x[:, :, None]
        Q = xe * wq + bq
        K = xe * wk + bk
        V = xe * wv + bv
        scores = jnp.einsum('bih,bjh->bij', Q, K)
        soft = jax.nn.softmax(scores * mask, axis=1)     # nn.Softmax(dim=1)
        sv = jnp.einsum('bij,bjh->bih', soft, V)
        x = sv.reshape(B, N * H) @ raw['att_w'][l].reshape(N * H, N) + raw['att_b'][l]
    h = jnp.maximum(jnp.concatenate([x, action], axis=1) @ raw['w1'] + raw['b1'], 0.0)
    h = jnp.maximum(h @ raw['w2'] + raw['b2'], 0.0)
    return h @ raw['w3'] + raw['b3']


def _check(out, ref, tol=2e-2):
    # bf16 MXU operands + EUP approx reciprocal => validate against the output scale.
    err = float(jnp.max(jnp.abs(out - ref)))
    scale = float(jnp.max(jnp.abs(ref)))
    assert err <= tol * (1.0 + scale), f"max |err|={err:.4e} vs scale={scale:.4e}"


if __name__ == "__main__":
    key = jax.random.PRNGKey(0)
    B, N, A = 2, 8, 4                                   # batch, num_obs, num_act
    k_obs, k_act, k_mask, k_par = jax.random.split(key, 4)

    obs = jax.random.normal(k_obs, (B, N), jnp.float32)
    action = jax.random.normal(k_act, (B, A), jnp.float32)
    # att_mask buffer: (batch, num_obs, num_obs) multiplicative 0/1 mask (as in the module)
    mask = jax.random.bernoulli(k_mask, 0.7, (B, N, N)).astype(jnp.float32)

    raw = init_params(k_par, N, A)
    params = prepare_kernel_params(raw, N)

    out = soft_q_network(obs, action, mask, params)
    jax.block_until_ready(out)
    assert out.shape == (B, 1)
    _check(out, soft_q_reference(obs, action, mask, raw))

    # exercise the multi-tile grid + batch-padding path (block_b=128 -> grid=(3,))
    B2 = 260
    k2o, k2a, k2m = jax.random.split(jax.random.PRNGKey(1), 3)
    obs2 = jax.random.normal(k2o, (B2, N), jnp.float32)
    act2 = jax.random.normal(k2a, (B2, A), jnp.float32)
    mask2 = jax.random.bernoulli(k2m, 0.7, (B2, N, N)).astype(jnp.float32)
    out2 = soft_q_network(obs2, act2, mask2, params, block_b=128)
    jax.block_until_ready(out2)
    assert out2.shape == (B2, 1)
    _check(out2, soft_q_reference(obs2, act2, mask2, raw))

    # default block_b (2048) with >1-tile-worth of batch -> 2 parallel tiles (v7x dual-TC path)
    out3 = soft_q_network(obs2, act2, mask2, params)
    jax.block_until_ready(out3)
    _check(out3, soft_q_reference(obs2, act2, mask2, raw))

    print("KERNEL_OK")
</pallas_src>

<mosaic_0001>
module attributes {stable_mosaic.version = 11 : i64} {
  func.func @_softq_kernel(%arg0: i32, %arg1: memref<3x4xf32, #tpu.memory_space<smem>>, %arg2: memref<8x128xf32, #tpu.memory_space<vmem>>, %arg3: memref<4x128xf32, #tpu.memory_space<vmem>>, %arg4: memref<64x128xbf16, #tpu.memory_space<vmem>>, %arg5: memref<3x8x16xf32, #tpu.memory_space<vmem>>, %arg6: memref<3x8x1xf32, #tpu.memory_space<vmem>>, %arg7: memref<256x12xf32, #tpu.memory_space<vmem>>, %arg8: memref<256x1xf32, #tpu.memory_space<vmem>>, %arg9: memref<256x256xbf16, #tpu.memory_space<vmem>>, %arg10: memref<256x1xf32, #tpu.memory_space<vmem>>, %arg11: memref<1x256xf32, #tpu.memory_space<vmem>>, %arg12: memref<1x1xf32, #tpu.memory_space<vmem>>, %arg13: memref<1x128xf32, #tpu.memory_space<vmem>>) attributes {dimension_semantics = [#tpu.dimension_semantics<parallel>], iteration_bounds = array<i64: 1>, scalar_prefetch = 0 : i64, scratch_operands = 0 : i64, tpu.core_type = #tpu.core_type<tc>, window_params = [{transform_indices = @transform_0, window_bounds = array<i64: 3, 4>}, {transform_indices = @transform_1, window_bounds = array<i64: 8, 128>}, {transform_indices = @transform_2, window_bounds = array<i64: 4, 128>}, {transform_indices = @transform_3, window_bounds = array<i64: 64, 128>}, {pipeline_mode = #tpu.pipeline_mode<synchronous>, transform_indices = @transform_4, window_bounds = array<i64: 3, 8, 16>}, {pipeline_mode = #tpu.pipeline_mode<synchronous>, transform_indices = @transform_5, window_bounds = array<i64: 3, 8, 1>}, {pipeline_mode = #tpu.pipeline_mode<synchronous>, transform_indices = @transform_6, window_bounds = array<i64: 256, 12>}, {pipeline_mode = #tpu.pipeline_mode<synchronous>, transform_indices = @transform_7, window_bounds = array<i64: 256, 1>}, {pipeline_mode = #tpu.pipeline_mode<synchronous>, transform_indices = @transform_8, window_bounds = array<i64: 256, 256>}, {pipeline_mode = #tpu.pipeline_mode<synchronous>, transform_indices = @transform_9, window_bounds = array<i64: 256, 1>}, {pipeline_mode = #tpu.pipeline_mode<synchronous>, transform_indices = @transform_10, window_bounds = array<i64: 1, 256>}, {pipeline_mode = #tpu.pipeline_mode<synchronous>, transform_indices = @transform_11, window_bounds = array<i64: 1, 1>}, {transform_indices = @transform_12, window_bounds = array<i64: 1, 128>}]} {
    %c0 = arith.constant 0 : index
    %c0_0 = arith.constant 0 : index
    %0 = vector.load %arg2[%c0, %c0_0] : memref<8x128xf32, #tpu.memory_space<vmem>>, vector<8x128xf32>
    %c0_1 = arith.constant 0 : index
    %c0_2 = arith.constant 0 : index
    %1 = vector.load %arg4[%c0_1, %c0_2] : memref<64x128xbf16, #tpu.memory_space<vmem>>, vector<64x128xbf16>
    %2 = arith.extf %1 : vector<64x128xbf16> to vector<64x128xf32>
    %3 = vector.shape_cast %2 : vector<64x128xf32> to vector<8x8x128xf32>
    %c0_3 = arith.constant 0 : index
    %c0_4 = arith.constant 0 : index
    %4 = memref.load %arg1[%c0_3, %c0_4] : memref<3x4xf32, #tpu.memory_space<smem>>
    %c0_5 = arith.constant 0 : index
    %c1 = arith.constant 1 : index
    %5 = memref.load %arg1[%c0_5, %c1] : memref<3x4xf32, #tpu.memory_space<smem>>
    %c0_6 = arith.constant 0 : index
    %c2 = arith.constant 2 : index
    %6 = memref.load %arg1[%c0_6, %c2] : memref<3x4xf32, #tpu.memory_space<smem>>
    %c0_7 = arith.constant 0 : index
    %c3 = arith.constant 3 : index
    %7 = memref.load %arg1[%c0_7, %c3] : memref<3x4xf32, #tpu.memory_space<smem>>
    %8 = vector.broadcast %4 : f32 to vector<8x128xf32>
    %9 = arith.mulf %8, %0 : vector<8x128xf32>
    %10 = vector.broadcast %6 : f32 to vector<8x128xf32>
    %11 = arith.addf %9, %10 : vector<8x128xf32>
    %12 = vector.broadcast %5 : f32 to vector<8x128xf32>
    %13 = arith.mulf %12, %0 : vector<8x128xf32>
    %14 = vector.broadcast %7 : f32 to vector<8x128xf32>
    %15 = arith.addf %13, %14 : vector<8x128xf32>
    %16 = vector.shape_cast %0 : vector<8x128xf32> to vector<1x8x128xf32>
    %17 = vector.shape_cast %11 : vector<8x128xf32> to vector<8x1x128xf32>
    %18 = vector.broadcast %17 : vector<8x1x128xf32> to vector<8x8x128xf32>
    %19 = vector.broadcast %16 : vector<1x8x128xf32> to vector<8x8x128xf32>
    %20 = arith.mulf %18, %19 : vector<8x8x128xf32>
    %21 = vector.shape_cast %15 : vector<8x128xf32> to vector<8x1x128xf32>
    %22 = vector.broadcast %21 : vector<8x1x128xf32> to vector<8x8x128xf32>
    %23 = arith.addf %20, %22 : vector<8x8x128xf32>
    %24 = arith.mulf %23, %3 : vector<8x8x128xf32>
    %cst = arith.constant dense<0xFF800000> : vector<8x128xf32>
    %25 = vector.multi_reduction <maximumf>, %24, %cst [0] : vector<8x8x128xf32> to vector<8x128xf32>
    %26 = vector.shape_cast %25 : vector<8x128xf32> to vector<1x8x128xf32>
    %27 = vector.broadcast %26 : vector<1x8x128xf32> to vector<8x8x128xf32>
    %28 = arith.subf %24, %27 : vector<8x8x128xf32>
    %29 = math.exp %28 : vector<8x8x128xf32>
    %cst_8 = arith.constant dense<0.000000e+00> : vector<8x128xf32>
    %30 = vector.multi_reduction <add>, %29, %cst_8 [0] : vector<8x8x128xf32> to vector<8x128xf32>
    %31 = tpu.reciprocal %30 {approx = true} : vector<8x128xf32> -> vector<8x128xf32>
    %32 = arith.mulf %0, %31 : vector<8x128xf32>
    %33 = vector.shape_cast %32 : vector<8x128xf32> to vector<1x8x128xf32>
    %34 = vector.shape_cast %31 : vector<8x128xf32> to vector<1x8x128xf32>
    %35 = vector.broadcast %33 : vector<1x8x128xf32> to vector<8x8x128xf32>
    %36 = arith.mulf %29, %35 : vector<8x8x128xf32>
    %cst_9 = arith.constant dense<0.000000e+00> : vector<8x128xf32>
    %37 = vector.multi_reduction <add>, %36, %cst_9 [1] : vector<8x8x128xf32> to vector<8x128xf32>
    %38 = vector.broadcast %34 : vector<1x8x128xf32> to vector<8x8x128xf32>
    %39 = arith.mulf %29, %38 : vector<8x8x128xf32>
    %cst_10 = arith.constant dense<0.000000e+00> : vector<8x128xf32>
    %40 = vector.multi_reduction <add>, %39, %cst_10 [1] : vector<8x8x128xf32> to vector<8x128xf32>
    %41 = tpu.concatenate %37, %40 in 0 : vector<8x128xf32>, vector<8x128xf32> -> vector<16x128xf32>
    %c0_11 = arith.constant 0 : index
    %c0_12 = arith.constant 0 : index
    %c0_13 = arith.constant 0 : index
    %42 = vector.load %arg5[%c0_11, %c0_12, %c0_13] : memref<3x8x16xf32, #tpu.memory_space<vmem>>, vector<1x8x16xf32>
    %43 = vector.shape_cast %42 : vector<1x8x16xf32> to vector<8x16xf32>
    %cst_14 = arith.constant dense<0.000000e+00> : vector<8x128xf32>
    %44 = tpu.matmul %43, %41, %cst_14 {dimension_numbers = #tpu.dot_dimension_numbers<[1], [0], [0], [1], [0, 0, 1, 1], [], []>} : vector<8x16xf32>, vector<16x128xf32>, vector<8x128xf32> -> vector<8x128xf32>
    %c0_15 = arith.constant 0 : index
    %c0_16 = arith.constant 0 : index
    %c0_17 = arith.constant 0 : index
    %45 = vector.load %arg6[%c0_15, %c0_16, %c0_17] : memref<3x8x1xf32, #tpu.memory_space<vmem>>, vector<1x8x1xf32>
    %46 = vector.shape_cast %45 : vector<1x8x1xf32> to vector<8x1xf32>
    %47 = vector.broadcast %46 : vector<8x1xf32> to vector<8x128xf32>
    %48 = arith.addf %44, %47 : vector<8x128xf32>
    %c1_18 = arith.constant 1 : index
    %c0_19 = arith.constant 0 : index
    %49 = memref.load %arg1[%c1_18, %c0_19] : memref<3x4xf32, #tpu.memory_space<smem>>
    %c1_20 = arith.constant 1 : index
    %c1_21 = arith.constant 1 : index
    %50 = memref.load %arg1[%c1_20, %c1_21] : memref<3x4xf32, #tpu.memory_space<smem>>
    %c1_22 = arith.constant 1 : index
    %c2_23 = arith.constant 2 : index
    %51 = memref.load %arg1[%c1_22, %c2_23] : memref<3x4xf32, #tpu.memory_space<smem>>
    %c1_24 = arith.constant 1 : index
    %c3_25 = arith.constant 3 : index
    %52 = memref.load %arg1[%c1_24, %c3_25] : memref<3x4xf32, #tpu.memory_space<smem>>
    %53 = vector.broadcast %49 : f32 to vector<8x128xf32>
    %54 = arith.mulf %53, %48 : vector<8x128xf32>
    %55 = vector.broadcast %51 : f32 to vector<8x128xf32>
    %56 = arith.addf %54, %55 : vector<8x128xf32>
    %57 = vector.broadcast %50 : f32 to vector<8x128xf32>
    %58 = arith.mulf %57, %48 : vector<8x128xf32>
    %59 = vector.broadcast %52 : f32 to vector<8x128xf32>
    %60 = arith.addf %58, %59 : vector<8x128xf32>
    %61 = vector.shape_cast %48 : vector<8x128xf32> to vector<1x8x128xf32>
    %62 = vector.shape_cast %56 : vector<8x128xf32> to vector<8x1x128xf32>
    %63 = vector.broadcast %62 : vector<8x1x128xf32> to vector<8x8x128xf32>
    %64 = vector.broadcast %61 : vector<1x8x128xf32> to vector<8x8x128xf32>
    %65 = arith.mulf %63, %64 : vector<8x8x128xf32>
    %66 = vector.shape_cast %60 : vector<8x128xf32> to vector<8x1x128xf32>
    %67 = vector.broadcast %66 : vector<8x1x128xf32> to vector<8x8x128xf32>
    %68 = arith.addf %65, %67 : vector<8x8x128xf32>
    %69 = arith.mulf %68, %3 : vector<8x8x128xf32>
    %cst_26 = arith.constant dense<0xFF800000> : vector<8x128xf32>
    %70 = vector.multi_reduction <maximumf>, %69, %cst_26 [0] : vector<8x8x128xf32> to vector<8x128xf32>
    %71 = vector.shape_cast %70 : vector<8x128xf32> to vector<1x8x128xf32>
    %72 = vector.broadcast %71 : vector<1x8x128xf32> to vector<8x8x128xf32>
    %73 = arith.subf %69, %72 : vector<8x8x128xf32>
    %74 = math.exp %73 : vector<8x8x128xf32>
    %cst_27 = arith.constant dense<0.000000e+00> : vector<8x128xf32>
    %75 = vector.multi_reduction <add>, %74, %cst_27 [0] : vector<8x8x128xf32> to vector<8x128xf32>
    %76 = tpu.reciprocal %75 {approx = true} : vector<8x128xf32> -> vector<8x128xf32>
    %77 = arith.mulf %48, %76 : vector<8x128xf32>
    %78 = vector.shape_cast %77 : vector<8x128xf32> to vector<1x8x128xf32>
    %79 = vector.shape_cast %76 : vector<8x128xf32> to vector<1x8x128xf32>
    %80 = vector.broadcast %78 : vector<1x8x128xf32> to vector<8x8x128xf32>
    %81 = arith.mulf %74, %80 : vector<8x8x128xf32>
    %cst_28 = arith.constant dense<0.000000e+00> : vector<8x128xf32>
    %82 = vector.multi_reduction <add>, %81, %cst_28 [1] : vector<8x8x128xf32> to vector<8x128xf32>
    %83 = vector.broadcast %79 : vector<1x8x128xf32> to vector<8x8x128xf32>
    %84 = arith.mulf %74, %83 : vector<8x8x128xf32>
    %cst_29 = arith.constant dense<0.000000e+00> : vector<8x128xf32>
    %85 = vector.multi_reduction <add>, %84, %cst_29 [1] : vector<8x8x128xf32> to vector<8x128xf32>
    %86 = tpu.concatenate %82, %85 in 0 : vector<8x128xf32>, vector<8x128xf32> -> vector<16x128xf32>
    %c1_30 = arith.constant 1 : index
    %c0_31 = arith.constant 0 : index
    %c0_32 = arith.constant 0 : index
    %87 = vector.load %arg5[%c1_30, %c0_31, %c0_32] : memref<3x8x16xf32, #tpu.memory_space<vmem>>, vector<1x8x16xf32>
    %88 = vector.shape_cast %87 : vector<1x8x16xf32> to vector<8x16xf32>
    %cst_33 = arith.constant dense<0.000000e+00> : vector<8x128xf32>
    %89 = tpu.matmul %88, %86, %cst_33 {dimension_numbers = #tpu.dot_dimension_numbers<[1], [0], [0], [1], [0, 0, 1, 1], [], []>} : vector<8x16xf32>, vector<16x128xf32>, vector<8x128xf32> -> vector<8x128xf32>
    %c1_34 = arith.constant 1 : index
    %c0_35 = arith.constant 0 : index
    %c0_36 = arith.constant 0 : index
    %90 = vector.load %arg6[%c1_34, %c0_35, %c0_36] : memref<3x8x1xf32, #tpu.memory_space<vmem>>, vector<1x8x1xf32>
    %91 = vector.shape_cast %90 : vector<1x8x1xf32> to vector<8x1xf32>
    %92 = vector.broadcast %91 : vector<8x1xf32> to vector<8x128xf32>
    %93 = arith.addf %89, %92 : vector<8x128xf32>
    %c2_37 = arith.constant 2 : index
    %c0_38 = arith.constant 0 : index
    %94 = memref.load %arg1[%c2_37, %c0_38] : memref<3x4xf32, #tpu.memory_space<smem>>
    %c2_39 = arith.constant 2 : index
    %c1_40 = arith.constant 1 : index
    %95 = memref.load %arg1[%c2_39, %c1_40] : memref<3x4xf32, #tpu.memory_space<smem>>
    %c2_41 = arith.constant 2 : index
    %c2_42 = arith.constant 2 : index
    %96 = memref.load %arg1[%c2_41, %c2_42] : memref<3x4xf32, #tpu.memory_space<smem>>
    %c2_43 = arith.constant 2 : index
    %c3_44 = arith.constant 3 : index
    %97 = memref.load %arg1[%c2_43, %c3_44] : memref<3x4xf32, #tpu.memory_space<smem>>
    %98 = vector.broadcast %94 : f32 to vector<8x128xf32>
    %99 = arith.mulf %98, %93 : vector<8x128xf32>
    %100 = vector.broadcast %96 : f32 to vector<8x128xf32>
    %101 = arith.addf %99, %100 : vector<8x128xf32>
    %102 = vector.broadcast %95 : f32 to vector<8x128xf32>
    %103 = arith.mulf %102, %93 : vector<8x128xf32>
    %104 = vector.broadcast %97 : f32 to vector<8x128xf32>
    %105 = arith.addf %103, %104 : vector<8x128xf32>
    %106 = vector.shape_cast %93 : vector<8x128xf32> to vector<1x8x128xf32>
    %107 = vector.shape_cast %101 : vector<8x128xf32> to vector<8x1x128xf32>
    %108 = vector.broadcast %107 : vector<8x1x128xf32> to vector<8x8x128xf32>
    %109 = vector.broadcast %106 : vector<1x8x128xf32> to vector<8x8x128xf32>
    %110 = arith.mulf %108, %109 : vector<8x8x128xf32>
    %111 = vector.shape_cast %105 : vector<8x128xf32> to vector<8x1x128xf32>
    %112 = vector.broadcast %111 : vector<8x1x128xf32> to vector<8x8x128xf32>
    %113 = arith.addf %110, %112 : vector<8x8x128xf32>
    %114 = arith.mulf %113, %3 : vector<8x8x128xf32>
    %cst_45 = arith.constant dense<0xFF800000> : vector<8x128xf32>
    %115 = vector.multi_reduction <maximumf>, %114, %cst_45 [0] : vector<8x8x128xf32> to vector<8x128xf32>
    %116 = vector.shape_cast %115 : vector<8x128xf32> to vector<1x8x128xf32>
    %117 = vector.broadcast %116 : vector<1x8x128xf32> to vector<8x8x128xf32>
    %118 = arith.subf %114, %117 : vector<8x8x128xf32>
    %119 = math.exp %118 : vector<8x8x128xf32>
    %cst_46 = arith.constant dense<0.000000e+00> : vector<8x128xf32>
    %120 = vector.multi_reduction <add>, %119, %cst_46 [0] : vector<8x8x128xf32> to vector<8x128xf32>
    %121 = tpu.reciprocal %120 {approx = true} : vector<8x128xf32> -> vector<8x128xf32>
    %122 = arith.mulf %93, %121 : vector<8x128xf32>
    %123 = vector.shape_cast %122 : vector<8x128xf32> to vector<1x8x128xf32>
    %124 = vector.shape_cast %121 : vector<8x128xf32> to vector<1x8x128xf32>
    %125 = vector.broadcast %123 : vector<1x8x128xf32> to vector<8x8x128xf32>
    %126 = arith.mulf %119, %125 : vector<8x8x128xf32>
    %cst_47 = arith.constant dense<0.000000e+00> : vector<8x128xf32>
    %127 = vector.multi_reduction <add>, %126, %cst_47 [1] : vector<8x8x128xf32> to vector<8x128xf32>
    %128 = vector.broadcast %124 : vector<1x8x128xf32> to vector<8x8x128xf32>
    %129 = arith.mulf %119, %128 : vector<8x8x128xf32>
    %cst_48 = arith.constant dense<0.000000e+00> : vector<8x128xf32>
    %130 = vector.multi_reduction <add>, %129, %cst_48 [1] : vector<8x8x128xf32> to vector<8x128xf32>
    %131 = tpu.concatenate %127, %130 in 0 : vector<8x128xf32>, vector<8x128xf32> -> vector<16x128xf32>
    %c2_49 = arith.constant 2 : index
    %c0_50 = arith.constant 0 : index
    %c0_51 = arith.constant 0 : index
    %132 = vector.load %arg5[%c2_49, %c0_50, %c0_51] : memref<3x8x16xf32, #tpu.memory_space<vmem>>, vector<1x8x16xf32>
    %133 = vector.shape_cast %132 : vector<1x8x16xf32> to vector<8x16xf32>
    %cst_52 = arith.constant dense<0.000000e+00> : vector<8x128xf32>
    %134 = tpu.matmul %133, %131, %cst_52 {dimension_numbers = #tpu.dot_dimension_numbers<[1], [0], [0], [1], [0, 0, 1, 1], [], []>} : vector<8x16xf32>, vector<16x128xf32>, vector<8x128xf32> -> vector<8x128xf32>
    %c2_53 = arith.constant 2 : index
    %c0_54 = arith.constant 0 : index
    %c0_55 = arith.constant 0 : index
    %135 = vector.load %arg6[%c2_53, %c0_54, %c0_55] : memref<3x8x1xf32, #tpu.memory_space<vmem>>, vector<1x8x1xf32>
    %136 = vector.shape_cast %135 : vector<1x8x1xf32> to vector<8x1xf32>
    %137 = vector.broadcast %136 : vector<8x1xf32> to vector<8x128xf32>
    %138 = arith.addf %134, %137 : vector<8x128xf32>
    %c0_56 = arith.constant 0 : index
    %c0_57 = arith.constant 0 : index
    %139 = vector.load %arg3[%c0_56, %c0_57] : memref<4x128xf32, #tpu.memory_space<vmem>>, vector<4x128xf32>
    %140 = tpu.concatenate %138, %139 in 0 : vector<8x128xf32>, vector<4x128xf32> -> vector<12x128xf32>
    %c0_58 = arith.constant 0 : index
    %c0_59 = arith.constant 0 : index
    %141 = vector.load %arg7[%c0_58, %c0_59] : memref<256x12xf32, #tpu.memory_space<vmem>>, vector<256x12xf32>
    %cst_60 = arith.constant dense<0.000000e+00> : vector<256x128xf32>
    %142 = tpu.matmul %141, %140, %cst_60 {dimension_numbers = #tpu.dot_dimension_numbers<[1], [0], [0], [1], [0, 0, 1, 1], [], []>} : vector<256x12xf32>, vector<12x128xf32>, vector<256x128xf32> -> vector<256x128xf32>
    %c0_61 = arith.constant 0 : index
    %c0_62 = arith.constant 0 : index
    %143 = vector.load %arg8[%c0_61, %c0_62] : memref<256x1xf32, #tpu.memory_space<vmem>>, vector<256x1xf32>
    %144 = vector.broadcast %143 : vector<256x1xf32> to vector<256x128xf32>
    %145 = arith.addf %142, %144 : vector<256x128xf32>
    %cst_63 = arith.constant 0.000000e+00 : f32
    %146 = vector.broadcast %cst_63 : f32 to vector<256x128xf32>
    %147 = arith.maximumf %145, %146 : vector<256x128xf32>
    %148 = arith.truncf %147 : vector<256x128xf32> to vector<256x128xbf16>
    %c0_64 = arith.constant 0 : index
    %c0_65 = arith.constant 0 : index
    %149 = vector.load %arg9[%c0_64, %c0_65] : memref<256x256xbf16, #tpu.memory_space<vmem>>, vector<256x256xbf16>
    %cst_66 = arith.constant dense<0.000000e+00> : vector<256x128xf32>
    %150 = tpu.matmul %149, %148, %cst_66 {dimension_numbers = #tpu.dot_dimension_numbers<[1], [0], [0], [1], [0, 0, 1, 1], [], []>} : vector<256x256xbf16>, vector<256x128xbf16>, vector<256x128xf32> -> vector<256x128xf32>
    %c0_67 = arith.constant 0 : index
    %c0_68 = arith.constant 0 : index
    %151 = vector.load %arg10[%c0_67, %c0_68] : memref<256x1xf32, #tpu.memory_space<vmem>>, vector<256x1xf32>
    %152 = vector.broadcast %151 : vector<256x1xf32> to vector<256x128xf32>
    %153 = arith.addf %150, %152 : vector<256x128xf32>
    %cst_69 = arith.constant 0.000000e+00 : f32
    %154 = vector.broadcast %cst_69 : f32 to vector<256x128xf32>
    %155 = arith.maximumf %153, %154 : vector<256x128xf32>
    %c0_70 = arith.constant 0 : index
    %c0_71 = arith.constant 0 : index
    %156 = vector.load %arg11[%c0_70, %c0_71] : memref<1x256xf32, #tpu.memory_space<vmem>>, vector<1x256xf32>
    %cst_72 = arith.constant dense<0.000000e+00> : vector<1x128xf32>
    %157 = tpu.matmul %156, %155, %cst_72 {dimension_numbers = #tpu.dot_dimension_numbers<[1], [0], [0], [1], [0, 0, 1, 1], [], []>} : vector<1x256xf32>, vector<256x128xf32>, vector<1x128xf32> -> vector<1x128xf32>
    %c0_73 = arith.constant 0 : index
    %c0_74 = arith.constant 0 : index
    %158 = vector.load %arg12[%c0_73, %c0_74] : memref<1x1xf32, #tpu.memory_space<vmem>>, vector<1x1xf32>
    %159 = vector.broadcast %158 : vector<1x1xf32> to vector<1x128xf32>
    %160 = arith.addf %157, %159 : vector<1x128xf32>
    %c0_75 = arith.constant 0 : index
    %c0_76 = arith.constant 0 : index
    %161 = vector.load %arg13[%c0_75, %c0_76] : memref<1x128xf32, #tpu.memory_space<vmem>>, vector<1x128xf32>
    tpu.vector_store %arg13[%c0_75, %c0_76], %160 {strides = array<i32>} : memref<1x128xf32, #tpu.memory_space<vmem>>, vector<1x128xf32>,
    return
  }
  func.func @transform_0(%arg0: i32) -> (i32, i32) {
    %c0_i32 = arith.constant 0 : i32
    %c0_i32_0 = arith.constant 0 : i32
    %c0_i32_1 = arith.constant 0 : i32
    return %c0_i32, %c0_i32_0 : i32, i32
  }
  func.func @transform_1(%arg0: i32) -> (i32, i32) {
    %c0_i32 = arith.constant 0 : i32
    %c0_i32_0 = arith.constant 0 : i32
    return %c0_i32, %arg0 : i32, i32
  }
  func.func @transform_2(%arg0: i32) -> (i32, i32) {
    %c0_i32 = arith.constant 0 : i32
    %c0_i32_0 = arith.constant 0 : i32
    return %c0_i32, %arg0 : i32, i32
  }
  func.func @transform_3(%arg0: i32) -> (i32, i32) {
    %c0_i32 = arith.constant 0 : i32
    %c0_i32_0 = arith.constant 0 : i32
    return %c0_i32, %arg0 : i32, i32
  }
  func.func @transform_4(%arg0: i32) -> (i32, i32, i32) {
    %c0_i32 = arith.constant 0 : i32
    %c0_i32_0 = arith.constant 0 : i32
    %c0_i32_1 = arith.constant 0 : i32
    %c0_i32_2 = arith.constant 0 : i32
    return %c0_i32, %c0_i32_0, %c0_i32_1 : i32, i32, i32
  }
  func.func @transform_5(%arg0: i32) -> (i32, i32, i32) {
    %c0_i32 = arith.constant 0 : i32
    %c0_i32_0 = arith.constant 0 : i32
    %c0_i32_1 = arith.constant 0 : i32
    %c0_i32_2 = arith.constant 0 : i32
    return %c0_i32, %c0_i32_0, %c0_i32_1 : i32, i32, i32
  }
  func.func @transform_6(%arg0: i32) -> (i32, i32) {
    %c0_i32 = arith.constant 0 : i32
    %c0_i32_0 = arith.constant 0 : i32
    %c0_i32_1 = arith.constant 0 : i32
    return %c0_i32, %c0_i32_0 : i32, i32
  }
  func.func @transform_7(%arg0: i32) -> (i32, i32) {
    %c0_i32 = arith.constant 0 : i32
    %c0_i32_0 = arith.constant 0 : i32
    %c0_i32_1 = arith.constant 0 : i32
    return %c0_i32, %c0_i32_0 : i32, i32
  }
  func.func @transform_8(%arg0: i32) -> (i32, i32) {
    %c0_i32 = arith.constant 0 : i32
    %c0_i32_0 = arith.constant 0 : i32
    %c0_i32_1 = arith.constant 0 : i32
    return %c0_i32, %c0_i32_0 : i32, i32
  }
  func.func @transform_9(%arg0: i32) -> (i32, i32) {
    %c0_i32 = arith.constant 0 : i32
    %c0_i32_0 = arith.constant 0 : i32
    %c0_i32_1 = arith.constant 0 : i32
    return %c0_i32, %c0_i32_0 : i32, i32
  }
  func.func @transform_10(%arg0: i32) -> (i32, i32) {
    %c0_i32 = arith.constant 0 : i32
    %c0_i32_0 = arith.constant 0 : i32
    %c0_i32_1 = arith.constant 0 : i32
    return %c0_i32, %c0_i32_0 : i32, i32
  }
  func.func @transform_11(%arg0: i32) -> (i32, i32) {
    %c0_i32 = arith.constant 0 : i32
    %c0_i32_0 = arith.constant 0 : i32
    %c0_i32_1 = arith.constant 0 : i32
    return %c0_i32, %c0_i32_0 : i32, i32
  }
  func.func @transform_12(%arg0: i32) -> (i32, i32) {
    %c0_i32 = arith.constant 0 : i32
    %c0_i32_0 = arith.constant 0 : i32
    return %c0_i32, %arg0 : i32, i32
  }
}

</mosaic_0001>

<bundles_post_ra>
// kernel: tpu_custom_call.1
= control target key start
LH: loop header
LB: loop body
LE: loop exit
PB: predicated region body
PF: predicated region fallthrough
CT: control target
= control target key end

     0   :  { %s4474_s0 = inlined_call_operand.vmem [shape: f32[3,4], index: 0, kind: input, shape index: {}]   ;;  %s4475_s1 = inlined_call_operand.vmem [shape: f32[8,128], index: 1, kind: input, shape index: {}]   ;;  %s4476_s2 = inlined_call_operand.vmem [shape: f32[4,128], index: 2, kind: input, shape index: {}]   ;;  %s4477_s3 = inlined_call_operand.vmem [shape: bf16[64,128], index: 3, kind: input, shape index: {}]   ;;  %s4478_s4 = inlined_call_operand.vmem [shape: f32[3,8,16], index: 4, kind: input, shape index: {}]   ;;  %s4479_s5 = inlined_call_operand.vmem [shape: f32[3,8,1], index: 5, kind: input, shape index: {}]   ;;  %s4480_s6 = inlined_call_operand.vmem [shape: f32[256,12], index: 6, kind: input, shape index: {}]   ;;  %s4481_s7 = inlined_call_operand.vmem [shape: f32[256,1], index: 7, kind: input, shape index: {}]   ;;  %s4482_s8 = inlined_call_operand.vmem [shape: bf16[256,256], index: 8, kind: input, shape index: {}]   ;;  %s4483_s9 = inlined_call_operand.vmem [shape: f32[256,1], index: 9, kind: input, shape index: {}]   ;;  %s4484_s10 = inlined_call_operand.vmem [shape: f32[1,256], index: 10, kind: input, shape index: {}]   ;;  %s4485_s11 = inlined_call_operand.<no memory space> [shape: f32[1,1], index: 11, kind: input, shape index: {}]   ;;  %s4486_s12 = inlined_call_operand.hbm [shape: f32[1,128], index: 12, kind: output, shape index: {}]  }
   0x1   :  { %v17_v0 = vstv %s4485_s11 }
   0x2   :  { %18 = vst [vmem:[#allocation2] sm:$0x1] %v17_v0 }
   0x3   :  { %19 = vsyncpa [#allocation5], 0 }
   0x4   :  { %20 = vsyncpa [#allocation4], 0  ;;  %s27_s25 = sshll.u32 %s4474_s0, 4  ;;  %s28_s25 = int_to_ptr.vmem [resolvable:$true] %s27_s25 }
   0x5   :  { %s3351_s26 = scalar_lea.vmem %s28_s25, 64  ;;  %p3356_p1 = scmp.lt.s32.totalorder %s28_s25, %s28_s25 }
   0x6   :  { %p3352_p0 = scmp.ne.s32.totalorder %s28_s25, %s3351_s26  ;;  %p3357_p2 = scmp.lt.s32.totalorder %s3351_s26, %s3351_s26 }
   0x8   :  { %p3358_p3 = por %p3357_p2, %p3356_p1 }
   0xa   :  { %p3359_p4 = pnand %p3358_p3, %p3352_p0 }
   0xc   :  { %3362 = shalt.err (!%p3359_p4)
}
   0xd   :  { %s3389_s27 = smov [#allocation3]  }
   0xe   :  { %30 = dma.vmem_to_smem %s28_s25, 64, %s3389_s27, [#allocation5]  }
   0xf   :  { %3385 = dma.done.wait [#allocation5], 64  }
  0x10   :  { %3386 = vsyncadd [#allocation5], 4294967232 }
  0x11   :  { %56 = sfence }
  0x12   :  { %v483_v1 = vld [vmem:[%s4479_s5] sm:$0xff]  ;;  %v3390_v2 = vmov 0   ;;  %v3391_v3 = vmov 0.0|0.0   ;;  %s75_s0 = sld [smem:[#allocation3]]  ;;  %s2811_s29 = sld [smem:[#allocation3 + $0x1]]  ;;  %v2820_v4 = vld [vmem:[%s4479_s5 + $0x8] sm:$0xff]  ;;  %v92_v5 = vlaneseq }
  0x13   :  { %3247 = vset.pattern.permute.xlu0 %v3390_v2  ;;  %3176 = vmatprep.subr.bf16.mxu1 %v3391_v3  ;;  %s2812_s14 = sld [smem:[#allocation3 + $0x2]]  ;;  %s2813_s15 = sld [smem:[#allocation3 + $0x3]]  ;;  %v3479_v6 = vld [vmem:[%s4475_s1] sm:$0xff]  ;;  %v1577_v7 = vld [vmem:[%s4481_s7 + $0x88] sm:$0xff]  ;;  %v3392_v11 = vmov 1966171168  }
  0x14   :  { %486 = vperm.xlu0 %3247, %v483_v1   ;;  %3248 = vset.pattern.permute.xlu1 %v3390_v2  ;;  %v90_v12 = vunpack.c.l.s4 %v3392_v11  ;;  %v3485_v13 = vshrl.u32 %v92_v5, 7  ;;  %v2895_v14 = vld [vmem:[%s4477_s3] sm:$0xff]   ;;  %v2910_v17 = vld [vmem:[%s4477_s3 + $0x8] sm:$0xff]   ;;  %v2911_v22 = vld [vmem:[%s4477_s3 + $0x10] sm:$0xff]   ;;  %vm3393_vm0 = vmmov 0   ;;  %v3394_v24 = vmov 0.0  }
  0x15   :  { %3182 = vmatprep.subr.bf16.mxu0 %v3391_v3  ;;  %v1561_v21 = vld [vmem:[%s4481_s7 + $0x8] sm:$0xff]  ;;  %3107 = vmatprep.mubr.msk.f32.mxu1 %vm3393_vm0, %v3394_v24  ;;  %v3504_v25 = vunpack.c.l.bf16 %v2895_v14  ;;  %v2912_v26 = vld [vmem:[%s4477_s3 + $0x18] sm:$0xff]   ;;  %v3518_v31 = vunpack.c.h.bf16 %v2895_v14  ;;  %v3520_v32 = vunpack.c.l.bf16 %v2910_v17  ;;  %v3522_v33 = vunpack.c.h.bf16 %v2910_v17  ;;  %s2815_s25 = sld [smem:[#allocation3 + $0x80]]  ;;  %s2816_s26 = sld [smem:[#allocation3 + $0x81]] }
  0x16   :  { %v91_v20 = vunpack.c.0.s8 %v90_v12  ;;  %3121 = vmatprep.mubr.msk.f32.mxu0 %vm3393_vm0, %v3394_v24  ;;  %v3513_v29 = vsub.s32 0, %v3485_v13  ;;  %v1579_v30 = vld [vmem:[%s4481_s7 + $0x98] sm:$0xff]  ;;  %v3524_v35 = vunpack.c.l.bf16 %v2911_v22  ;;  %v3529_v39 = vunpack.c.h.bf16 %v2911_v22  ;;  %v1581_v0 = vld [vmem:[%s4481_s7 + $0xa8] sm:$0xff]  ;;  %s2817_s27 = sld [smem:[#allocation3 + $0x82]]  ;;  %s2818_s11 = sld [smem:[#allocation3 + $0x83]] }
  0x17   :  { %v3531_v40 = vunpack.c.l.bf16 %v2912_v26  ;;  %v3533_v41 = vunpack.c.h.bf16 %v2912_v26  ;;  %v1563_v47 = vld [vmem:[%s4481_s7 + $0x18] sm:$0xff]  ;;  %vm451_vm1 = vcmask 1041409   ;;  %vm453_vm2 = vcmask 1042434   ;;  %s2822_s17 = sld [smem:[#allocation3 + $0x100]]  ;;  %s2823_s18 = sld [smem:[#allocation3 + $0x101]] }
  0x18   :  { %969 = vperm.xlu0 %3247, %v2820_v4   ;;  %v79_v8 = vstv %s75_s0  ;;  %v83_v10 = vstv %s2811_s29  ;;  %v3510_v28 = vsub.s32 %v91_v20, %v3485_v13  ;;  %vm455_vm3 = vcmask 1043459   ;;  %s2824_s20 = sld [smem:[#allocation3 + $0x102]]  ;;  %s2825_s21 = sld [smem:[#allocation3 + $0x103]] }
  0x19   :  { %v80_v9 = vmul.f32 %v79_v8, %v3479_v6  ;;  %v81_v15 = vstv %s2812_s14  ;;  %v84_v16 = vmul.f32 %v83_v10, %v3479_v6  ;;  %v85_v19 = vstv %s2813_s15 }
  0x1a   :  { %vm457_vm4 = vcmask 1044484   ;;  %vm459_vm5 = vcmask 1045509   ;;  %vm461_vm6 = vcmask 1046534   ;;  %vm463_vm7 = vcmask 1047559  }
  0x1b   :  { %v82_v18 = vadd.f32 %v81_v15, %v80_v9  ;;  %v86_v23 = vadd.f32 %v85_v19, %v84_v16  ;;  %vm489_vm8 = vcmask 130048   ;;  %vm1752_vm9 = vcmask 97280  }
  0x1c   :  { %1679 = vperm.xlu0 %3247, %v1577_v7   ;;  %vm1849_vm10 = vcmask 1043456   ;;  %vm3395_vm11 = vmmov 1  }
  0x1d   :  { %v88_v27 = vcombine.high %v82_v18, %v82_v18  ;;  %v186_v34 = vcombine.high %v86_v23, %v86_v23  ;;  %v95_v36 = vrot.slane %v82_v18, %v3510_v28  ;;  %v193_v38 = vrot.slane %v86_v23, %v3510_v28  ;;  %vm3186_vm12 = vmpackc.low %vm1849_vm10, %vm3395_vm11 }
  0x1f   :  { %v102_v37 = vrot.slane %v88_v27, %v3510_v28  ;;  %v200_v42 = vrot.slane %v186_v34, %v3510_v28  ;;  %v103_v43 = vcombine.high %v95_v36, %v95_v36  ;;  %v111_v45 = vrot.slane %v95_v36, %v3510_v28  ;;  %v1565_v36 = vld [vmem:[%s4481_s7 + $0x28] sm:$0xff] }
  0x20   :  { %1599 = vperm.xlu0 %3247, %v1561_v21   ;;  %v201_v48 = vcombine.high %v193_v38, %v193_v38  ;;  %v209_v50 = vrot.slane %v193_v38, %v3510_v28 }
  0x21   :  { %v104_v44 = vcombine.high %v102_v37, %v102_v37  ;;  %v118_v46 = vrot.slane %v102_v37, %v3510_v28  ;;  %v202_v49 = vcombine.high %v200_v42, %v200_v42  ;;  %v216_v51 = vrot.slane %v200_v42, %v3510_v28 }
  0x22   :  { %v125_v52 = vrot.slane %v103_v43, %v3510_v28  ;;  %v133_v54 = vcombine.high %v111_v45, %v111_v45  ;;  %v140_v56 = vrot.slane %v111_v45, %v3513_v29  ;;  %v223_v58 = vrot.slane %v201_v48, %v3510_v28 }
  0x23   :  { %v132_v53 = vrot.slane %v104_v44, %v3510_v28  ;;  %v134_v55 = vcombine.high %v118_v46, %v118_v46  ;;  %v156_v57 = vrot.slane %v118_v46, %v3513_v29  ;;  %v230_v59 = vrot.slane %v202_v49, %v3510_v28 }
  0x24   :  { %1689 = vperm.xlu0 %3247, %v1579_v30   ;;  %v135_v60 = vcombine.high %v125_v52, %v125_v52  ;;  %v144_v62 = vrot.slane %v125_v52, %v3513_v29  ;;  %v148_v63 = vrot.slane %v133_v54, %v3513_v29  ;;  %v177_v4 = vmul.f32 %v140_v56, %v3479_v6  ;;  %v1583_v56 = vld [vmem:[%s4481_s7 + $0xb8] sm:$0xff] }
  0x25   :  { %v136_v61 = vcombine.high %v132_v53, %v132_v53  ;;  %v160_v1 = vrot.slane %v132_v53, %v3513_v29  ;;  %v164_v2 = vrot.slane %v134_v55, %v3513_v29  ;;  %v181_v5 = vmul.f32 %v156_v57, %v3479_v6 }
  0x26   :  { %v152_v7 = vrot.slane %v135_v60, %v3513_v29  ;;  %v178_v9 = vmul.f32 %v144_v62, %v3479_v6  ;;  %v179_v10 = vmul.f32 %v148_v63, %v3479_v6  ;;  %v231_v14 = vcombine.high %v209_v50, %v209_v50  ;;  %v1567_v63 = vld [vmem:[%s4481_s7 + $0x38] sm:$0xff] }
  0x27   :  { %v168_v8 = vrot.slane %v136_v61, %v3513_v29  ;;  %v182_v11 = vmul.f32 %v160_v1, %v3479_v6  ;;  %v183_v12 = vmul.f32 %v164_v2, %v3479_v6  ;;  %v232_v15 = vcombine.high %v216_v51, %v216_v51 }
  0x28   :  { %1609 = vperm.xlu0 %3247, %v1563_v47   ;;  %v180_v16 = vmul.f32 %v152_v7, %v3479_v6  ;;  %v233_v18 = vcombine.high %v223_v58, %v223_v58  ;;  %v234_v19 = vcombine.high %v230_v59, %v230_v59  ;;  %v238_v20 = vrot.slane %v209_v50, %v3513_v29  ;;  %v1585_v7 = vld [vmem:[%s4481_s7 + $0xc8] sm:$0xff] }
  0x29   :  { %v184_v17 = vmul.f32 %v168_v8, %v3479_v6  ;;  %v242_v21 = vrot.slane %v223_v58, %v3513_v29  ;;  %v246_v22 = vrot.slane %v231_v14, %v3513_v29  ;;  %v254_v23 = vrot.slane %v216_v51, %v3513_v29 }
  0x2a   :  { %v250_v26 = vrot.slane %v233_v18, %v3513_v29  ;;  %v258_v27 = vrot.slane %v230_v59, %v3513_v29  ;;  %v262_v30 = vrot.slane %v232_v15, %v3513_v29  ;;  %v266_v34 = vrot.slane %v234_v19, %v3513_v29  ;;  %v1569_v15 = vld [vmem:[%s4481_s7 + $0x48] sm:$0xff] }
  0x2b   :  { %v275_v37 = vadd.f32 %v238_v20, %v177_v4  ;;  %v276_v38 = vadd.f32 %v242_v21, %v178_v9  ;;  %v277_v42 = vadd.f32 %v246_v22, %v179_v10  ;;  %v279_v43 = vadd.f32 %v254_v23, %v181_v5  ;;  %v1587_v21 = vld [vmem:[%s4481_s7 + $0xd8] sm:$0xff] }
  0x2c   :  { %1699 = vperm.xlu0 %3247, %v1581_v0   ;;  %v278_v44 = vadd.f32 %v250_v26, %v180_v16  ;;  %v280_v45 = vadd.f32 %v258_v27, %v182_v11  ;;  %v281_v46 = vadd.f32 %v262_v30, %v183_v12  ;;  %v282_v47 = vadd.f32 %v266_v34, %v184_v17  ;;  %v1571_v23 = vld [vmem:[%s4481_s7 + $0x58] sm:$0xff] }
  0x2d   :  { %v283_v48 = vmul.f32 %v3504_v25, %v275_v37  ;;  %v284_v49 = vmul.f32 %v3518_v31, %v276_v38  ;;  %v285_v50 = vmul.f32 %v3520_v32, %v277_v42  ;;  %v287_v51 = vmul.f32 %v3524_v35, %v279_v43  ;;  %v1589_v37 = vld [vmem:[%s4481_s7 + $0xe8] sm:$0xff] }
  0x2e   :  { %v286_v52 = vmul.f32 %v3522_v33, %v278_v44  ;;  %v288_v53 = vmul.f32 %v3529_v39, %v280_v45  ;;  %v289_v54 = vmul.f32 %v3531_v40, %v281_v46  ;;  %v290_v55 = vmul.f32 %v3533_v41, %v282_v47  ;;  %v1573_v45 = vld [vmem:[%s4481_s7 + $0x68] sm:$0xff] }
  0x2f   :  { %v291_v57 = vmax.f32 %v283_v48, %v287_v51 }
  0x30   :  { %1619 = vperm.xlu0 %3247, %v1565_v36   ;;  %v292_v58 = vmax.f32 %v284_v49, %v288_v53  ;;  %v293_v59 = vmax.f32 %v285_v50, %v289_v54  ;;  %v294_v60 = vmax.f32 %v286_v52, %v290_v55 }
  0x32   :  { %v295_v61 = vmax.f32 %v291_v57, %v292_v58  ;;  %v296_v62 = vmax.f32 %v293_v59, %v294_v60  ;;  %v2177_v58 = vld [vmem:[%s4483_s9 + $0x98] sm:$0xff] }
  0x34   :  { %1709 = vperm.xlu0 %3247, %v1583_v56   ;;  %v297_v0 = vmax.f32 %v295_v61, %v296_v62 }
  0x36   :  { %v298_v1 = vsub.f32 %v283_v48, %v297_v0  ;;  %v299_v2 = vsub.f32 %v284_v49, %v297_v0  ;;  %v300_v4 = vsub.f32 %v285_v50, %v297_v0  ;;  %v301_v5 = vsub.f32 %v286_v52, %v297_v0  ;;  %v1591_v50 = vld [vmem:[%s4481_s7 + $0xf8] sm:$0xff] }
  0x37   :  { %v302_v8 = vsub.f32 %v287_v51, %v297_v0  ;;  %v303_v12 = vsub.f32 %v288_v53, %v297_v0  ;;  %v304_v16 = vsub.f32 %v289_v54, %v297_v0  ;;  %v305_v18 = vsub.f32 %v290_v55, %v297_v0  ;;  %v1575_v53 = vld [vmem:[%s4481_s7 + $0x78] sm:$0xff]  ;;  %v2175_v54 = vld [vmem:[%s4483_s9 + $0x88] sm:$0xff] }
  0x38   :  { %1629 = vperm.xlu0 %3247, %v1567_v63   ;;  %v306_v9 = vmul.f32 1.442695, %v298_v1  ;;  %v308_v10 = vmul.f32 1.442695, %v299_v2  ;;  %v310_v11 = vmul.f32 1.442695, %v300_v4 }
  0x39   :  { %v312_v14 = vmul.f32 1.442695, %v301_v5  ;;  %v314_v17 = vmul.f32 1.442695, %v302_v8  ;;  %v316_v19 = vmul.f32 1.442695, %v303_v12 }
  0x3a   :  { %3297 = vpow2.f32 %v306_v9  ;;  %v318_v20 = vmul.f32 1.442695, %v304_v16  ;;  %v320_v22 = vmul.f32 1.442695, %v305_v18  ;;  %v2159_v55 = vld [vmem:[%s4483_s9 + $0x8] sm:$0xff] }
  0x3b   :  { %3299 = vpow2.f32 %v308_v10 }
  0x3c   :  { %1719 = vperm.xlu0 %3247, %v1585_v7   ;;  %3301 = vpow2.f32 %v310_v11  ;;  %v2161_v11 = vld [vmem:[%s4483_s9 + $0x18] sm:$0xff] }
  0x3d   :  { %3303 = vpow2.f32 %v312_v14 }
  0x3e   :  { %3305 = vpow2.f32 %v314_v17 }
  0x3f   :  { %3307 = vpow2.f32 %v316_v19 }
  0x40   :  { %1639 = vperm.xlu0 %3247, %v1569_v15   ;;  %3309 = vpow2.f32 %v318_v20 }
  0x41   :  { %3311 = vpow2.f32 %v320_v22 }
  0x44   :  { %1729 = vperm.xlu0 %3247, %v1587_v21   ;;  %v3298_v26 = vpop.eup %3297 }
  0x45   :  { %v3300_v27 = vpop.eup %3299 }
  0x46   :  { %v3302_v30 = vpop.eup %3301  ;;  %v322_v34 = vadd.f32 %v3300_v27, %v3298_v26 }
  0x47   :  { %v3603_v36 = vpop.eup %3303 }
  0x48   :  { %1649 = vperm.xlu0 %3247, %v1571_v23   ;;  %v323_v38 = vadd.f32 %v3302_v30, %v322_v34  ;;  %v3608_v42 = vpop.eup %3305 }
  0x49   :  { %v3611_v44 = vpop.eup %3307 }
  0x4a   :  { %v324_v43 = vadd.f32 %v3603_v36, %v323_v38  ;;  %v3617_v47 = vpop.eup %3309  ;;  %v2179_v38 = vld [vmem:[%s4483_s9 + $0xa8] sm:$0xff] }
  0x4b   :  { %v3620_v49 = vpop.eup %3311 }
  0x4c   :  { %1739 = vperm.xlu0 %3247, %v1589_v37   ;;  %v325_v46 = vadd.f32 %v3608_v42, %v324_v43 }
  0x4e   :  { %v326_v48 = vadd.f32 %v3611_v44, %v325_v46 }
  0x50   :  { %1659 = vperm.xlu0 %3247, %v1573_v45   ;;  %v327_v51 = vadd.f32 %v3617_v47, %v326_v48 }
  0x52   :  { %v328_v52 = vadd.f32 %v3620_v49, %v327_v51 }
  0x54   :  { %1749 = vperm.xlu0 %3247, %v1591_v50   ;;  %3313 = vrcp.f32 %v328_v52 }
  0x58   :  { %1669 = vperm.xlu0 %3247, %v1575_v53  }
  0x5c   :  { %2277 = vperm.xlu0 %3247, %v2175_v54  }
  0x5e   :  { %v3636_v56 = vpop.eup %3313 }
  0x5f   :  { %v330_v57 = vmul.f32 %v3636_v56, %v3479_v6  ;;  %v3644_v59 = vmul.f32 %v3636_v56, %v3298_v26  ;;  %v3647_v60 = vmul.f32 %v3636_v56, %v3300_v27  ;;  %v3650_v61 = vmul.f32 %v3636_v56, %v3302_v30 }
  0x60   :  { %2197 = vperm.xlu0 %3247, %v2159_v55  }
  0x61   :  { %v331_v62 = vmul.f32 %v3298_v26, %v330_v57  ;;  %v332_v63 = vmul.f32 %v3300_v27, %v330_v57  ;;  %v333_v0 = vmul.f32 %v3302_v30, %v330_v57  ;;  %v334_v1 = vmul.f32 %v3603_v36, %v330_v57 }
  0x62   :  { %v335_v6 = vmul.f32 %v3608_v42, %v330_v57  ;;  %v336_v2 = vmul.f32 %v3611_v44, %v330_v57  ;;  %v337_v4 = vmul.f32 %v3617_v47, %v330_v57  ;;  %v338_v5 = vmul.f32 %v3620_v49, %v330_v57 }
  0x63   :  { %v339_v7 = vrot.slane %v331_v62, 4  ;;  %v345_v8 = vrot.slane %v332_v63, 4  ;;  %v351_v9 = vrot.slane %v333_v0, 4  ;;  %v357_v10 = vrot.slane %v334_v1, 4 }
  0x64   :  { %2287 = vperm.xlu0 %3247, %v2177_v58   ;;  %v363_v12 = vrot.slane %v335_v6, 4  ;;  %v369_v14 = vrot.slane %v336_v2, 4  ;;  %v375_v15 = vrot.slane %v337_v4, 4  ;;  %v381_v16 = vrot.slane %v338_v5, 4 }
  0x65   :  { %v340_v17 = vadd.f32 %v339_v7, %v331_v62  ;;  %v346_v18 = vadd.f32 %v345_v8, %v332_v63  ;;  %v352_v19 = vadd.f32 %v351_v9, %v333_v0  ;;  %v358_v20 = vadd.f32 %v357_v10, %v334_v1 }
  0x66   :  { %v364_v21 = vadd.f32 %v363_v12, %v335_v6  ;;  %v370_v22 = vadd.f32 %v369_v14, %v336_v2  ;;  %v376_v23 = vadd.f32 %v375_v15, %v337_v4  ;;  %v382_v26 = vadd.f32 %v381_v16, %v338_v5  ;;  %v2163_v6 = vld [vmem:[%s4483_s9 + $0x28] sm:$0xff] }
  0x67   :  { %v341_v27 = vrot.slane %v340_v17, 2  ;;  %v347_v30 = vrot.slane %v346_v18, 2  ;;  %v353_v34 = vrot.slane %v352_v19, 2  ;;  %v359_v37 = vrot.slane %v358_v20, 2 }
  0x68   :  { %2207 = vperm.xlu0 %3247, %v2161_v11   ;;  %v365_v43 = vrot.slane %v364_v21, 2  ;;  %v371_v45 = vrot.slane %v370_v22, 2  ;;  %v377_v46 = vrot.slane %v376_v23, 2  ;;  %v383_v48 = vrot.slane %v382_v26, 2 }
  0x69   :  { %v342_v50 = vadd.f32 %v341_v27, %v340_v17  ;;  %v348_v51 = vadd.f32 %v347_v30, %v346_v18  ;;  %v354_v52 = vadd.f32 %v353_v34, %v352_v19  ;;  %v360_v53 = vadd.f32 %v359_v37, %v358_v20  ;;  %v2181_v17 = vld [vmem:[%s4483_s9 + $0xb8] sm:$0xff] }
  0x6a   :  { %v3663_v54 = vadd.f32 %v365_v43, %v364_v21  ;;  %v3665_v55 = vadd.f32 %v371_v45, %v370_v22  ;;  %v3667_v57 = vadd.f32 %v377_v46, %v376_v23  ;;  %v3669_v58 = vadd.f32 %v383_v48, %v382_v26 }
  0x6b   :  { %v343_v62 = vrot.slane %v342_v50, 1  ;;  %v349_v63 = vrot.slane %v348_v51, 1  ;;  %v355_v0 = vrot.slane %v354_v52, 1  ;;  %v361_v1 = vrot.slane %v360_v53, 1 }
  0x6c   :  { %2297 = vperm.xlu0 %3247, %v2179_v38   ;;  %v390_v2 = vmul.f32 %v3636_v56, %v3603_v36  ;;  %v391_v4 = vmul.f32 %v3636_v56, %v3608_v42  ;;  %v392_v5 = vmul.f32 %v3636_v56, %v3611_v44  ;;  %v393_v7 = vmul.f32 %v3636_v56, %v3617_v47 }
  0x6d   :  { %v367_v8 = vrot.slane %v3663_v54, 1  ;;  %v373_v9 = vrot.slane %v3665_v55, 1  ;;  %v379_v10 = vrot.slane %v3667_v57, 1  ;;  %v385_v11 = vrot.slane %v3669_v58, 1 }
  0x6e   :  { %v3686_v12 = vadd.f32 %v343_v62, %v342_v50  ;;  %v3688_v36 = vadd.f32 %v349_v63, %v348_v51  ;;  %v3690_v14 = vadd.f32 %v355_v0, %v354_v52  ;;  %v3692_v42 = vadd.f32 %v361_v1, %v360_v53 }
  0x6f   :  { %v394_v44 = vmul.f32 %v3636_v56, %v3620_v49  ;;  %v395_v47 = vrot.slane %v3644_v59, 4  ;;  %v401_v15 = vrot.slane %v3647_v60, 4  ;;  %v407_v16 = vrot.slane %v3650_v61, 4 }
  0x70   :  { %2217 = vperm.xlu0 %3247, %v2163_v6   ;;  %v413_v18 = vrot.slane %v390_v2, 4  ;;  %v419_v19 = vrot.slane %v391_v4, 4  ;;  %v425_v20 = vrot.slane %v392_v5, 4  ;;  %v431_v21 = vrot.slane %v393_v7, 4 }
  0x71   :  { %v396_v22 = vadd.f32 %v395_v47, %v3644_v59  ;;  %v402_v23 = vadd.f32 %v401_v15, %v3647_v60  ;;  %v408_v49 = vadd.f32 %v407_v16, %v3650_v61  ;;  %v437_v56 = vrot.slane %v394_v44, 4  ;;  %v2165_v59 = vld [vmem:[%s4483_s9 + $0x38] sm:$0xff] }
  0x72   :  { %v414_v26 = vadd.f32 %v413_v18, %v390_v2  ;;  %v420_v27 = vadd.f32 %v419_v19, %v391_v4  ;;  %v426_v30 = vadd.f32 %v425_v20, %v392_v5  ;;  %v432_v34 = vadd.f32 %v431_v21, %v393_v7  ;;  %v2183_v7 = vld [vmem:[%s4483_s9 + $0xc8] sm:$0xff] }
  0x73   :  { %v397_v37 = vrot.slane %v396_v22, 2  ;;  %v403_v38 = vrot.slane %v402_v23, 2  ;;  %v409_v43 = vrot.slane %v408_v49, 2  ;;  %v438_v45 = vadd.f32 %v437_v56, %v394_v44 }
  0x74   :  { %2307 = vperm.xlu0 %3247, %v2181_v17   ;;  %v415_v60 = vrot.slane %v414_v26, 2  ;;  %v421_v46 = vrot.slane %v420_v27, 2  ;;  %v427_v61 = vrot.slane %v426_v30, 2  ;;  %v433_v48 = vrot.slane %v432_v34, 2 }
  0x75   :  { %v398_v50 = vadd.f32 %v397_v37, %v396_v22  ;;  %v404_v51 = vadd.f32 %v403_v38, %v402_v23  ;;  %v410_v52 = vadd.f32 %v409_v43, %v408_v49  ;;  %v439_v53 = vrot.slane %v438_v45, 2 }
  0x76   :  { %v416_v62 = vadd.f32 %v415_v60, %v414_v26  ;;  %v422_v63 = vadd.f32 %v421_v46, %v420_v27  ;;  %v428_v0 = vadd.f32 %v427_v61, %v426_v30  ;;  %v434_v1 = vadd.f32 %v433_v48, %v432_v34  ;;  %v2167_v30 = vld [vmem:[%s4483_s9 + $0x48] sm:$0xff]  ;;  %v2169_v60 = vld [vmem:[%s4483_s9 + $0x58] sm:$0xff]  ;;  %v482_v46 = vld [vmem:[%s4478_s4] sm:$0xff] }
  0x77   :  { %v399_v6 = vrot.slane %v398_v50, 1  ;;  %v405_v2 = vrot.slane %v404_v51, 1  ;;  %v411_v4 = vrot.slane %v410_v52, 1  ;;  %v440_v5 = vadd.f32 %v439_v53, %v438_v45  ;;  %v2187_v61 = vld [vmem:[%s4483_s9 + $0xe8] sm:$0xff] }
  0x78   :  { %2227 = vperm.xlu0 %3247, %v2165_v59   ;;  %v417_v44 = vrot.slane %v416_v62, 1  ;;  %v423_v47 = vrot.slane %v422_v63, 1  ;;  %v429_v15 = vrot.slane %v428_v0, 1  ;;  %v435_v16 = vrot.slane %v434_v1, 1  ;;  %v2171_v48 = vld [vmem:[%s4483_s9 + $0x68] sm:$0xff] }
  0x79   :  { %v400_v17 = vadd.f32 %v399_v6, %v398_v50  ;;  %v406_v18 = vadd.f32 %v405_v2, %v404_v51  ;;  %v412_v19 = vadd.f32 %v411_v4, %v410_v52  ;;  %v441_v20 = vrot.slane %v440_v5, 1  ;;  %v2173_v50 = vld [vmem:[%s4483_s9 + $0x78] sm:$0xff] }
  0x7a   :  { %v368_v21 = vadd.f32 %v367_v8, %v3663_v54  ;;  %v418_v22 = vadd.f32 %v417_v44, %v416_v62  ;;  %v424_v23 = vadd.f32 %v423_v47, %v422_v63  ;;  %v374_v49 = vadd.f32 %v373_v9, %v3665_v55 }
  0x7b   :  { %v430_v56 = vadd.f32 %v429_v15, %v428_v0  ;;  %v452_v26 = vsel %vm451_vm1, %v3688_v36, %v3686_v12  ;;  %v474_v27 = vsel %vm451_vm1, %v406_v18, %v400_v17  ;;  %v380_v54 = vadd.f32 %v379_v10, %v3667_v57 }
  0x7c   :  { %2317 = vperm.xlu0 %3247, %v2183_v7   ;;  %v436_v8 = vadd.f32 %v435_v16, %v434_v1  ;;  %v454_v34 = vsel %vm453_vm2, %v3690_v14, %v452_v26  ;;  %v475_v55 = vsel %vm453_vm2, %v412_v19, %v474_v27  ;;  %v386_v9 = vadd.f32 %v385_v11, %v3669_v58  ;;  %v2185_v58 = vld [vmem:[%s4483_s9 + $0xd8] sm:$0xff] }
  0x7d   :  { %v442_v12 = vadd.f32 %v441_v20, %v440_v5  ;;  %v456_v36 = vsel %vm455_vm3, %v3692_v42, %v454_v34  ;;  %v476_v37 = vsel %vm455_vm3, %v418_v22, %v475_v55  ;;  %v567_v52 = vstv %s2815_s25 }
  0x7e   :  { %v458_v38 = vsel %vm457_vm4, %v368_v21, %v456_v36  ;;  %v477_v57 = vsel %vm457_vm4, %v424_v23, %v476_v37  ;;  %v571_v53 = vstv %s2816_s26  ;;  %v569_v0 = vstv %s2817_s27 }
  0x7f   :  { %v460_v10 = vsel %vm459_vm5, %v374_v49, %v458_v38  ;;  %v478_v14 = vsel %vm459_vm5, %v430_v56, %v477_v57  ;;  %v573_v1 = vstv %s2818_s11 }
  0x80   :  { %2237 = vperm.xlu0 %3247, %v2167_v30   ;;  %v462_v11 = vsel %vm461_vm6, %v380_v54, %v460_v10  ;;  %v479_v42 = vsel %vm461_vm6, %v436_v8, %v478_v14 }
  0x81   :  { %v464_v43 = vsel %vm463_vm7, %v386_v9, %v462_v11  ;;  %v480_v45 = vsel %vm463_vm7, %v442_v12, %v479_v42 }
  0x82   :  { %v3177_v59 = vpack.c.bf16 %v480_v45, %v464_v43 }
  0x84   :  { %2327 = vperm.xlu0 %3247, %v2185_v58   ;;  %3178 = vmatpush3.bf16.msra.mxu1 %v3177_v59 }
  0x85   :  { %3179 = vmatprep.subr.bf16.mxu1 %v3391_v3  ;;  %v2189_v3 = vld [vmem:[%s4483_s9 + $0xf8] sm:$0xff] }
  0x87   :  { %3108 = vmatmul.mubr.msk.f32.vlgmr.msra.gmra.mrb[0].mxu1 %vm489_vm8, %v482_v46 }
  0x88   :  { %2247 = vperm.xlu0 %3247, %v2169_v60   ;;  %3114 = vmatprep.mubr.msk.f32.mxu1 %vm3393_vm0, %v3394_v24 }
  0x8c   :  { %2337 = vperm.xlu0 %3247, %v2187_v61  }
  0x90   :  { %2257 = vperm.xlu0 %3247, %v2171_v48  }
  0x93   :  { %v487_v24 = vpop.permute.xlu0 %486 }
  0x94   :  { %2347 = vperm.xlu0 %3247, %v2189_v3  }
  0x98   :  { %2267 = vperm.xlu0 %3247, %v2173_v50  }
 0x15a   :  { %v559_v51 = vpop.f32.mrb[0].mxu1 }
 0x15b   :  { %v3769_v62 = vadd.f32 %v559_v51, %v487_v24  ;;  %v3109_v63 = vpop.f32.mrb[1].mxu1 }
 0x15d   :  { %v568_v6 = vmul.f32 %v567_v52, %v3769_v62  ;;  %v572_v2 = vmul.f32 %v571_v53, %v3769_v62 }
 0x15f   :  { %v570_v4 = vadd.f32 %v569_v0, %v568_v6  ;;  %v574_v5 = vadd.f32 %v573_v1, %v572_v2 }
 0x161   :  { %v583_v7 = vrot.slane %v570_v4, %v3510_v28  ;;  %v576_v44 = vcombine.high %v570_v4, %v570_v4  ;;  %v674_v47 = vcombine.high %v574_v5, %v574_v5  ;;  %v681_v15 = vrot.slane %v574_v5, %v3510_v28 }
 0x163   :  { %v599_v16 = vrot.slane %v583_v7, %v3510_v28  ;;  %v590_v17 = vrot.slane %v576_v44, %v3510_v28  ;;  %v591_v18 = vcombine.high %v583_v7, %v583_v7  ;;  %v688_v19 = vrot.slane %v674_v47, %v3510_v28 }
 0x164   :  { %v689_v20 = vcombine.high %v681_v15, %v681_v15  ;;  %v697_v21 = vrot.slane %v681_v15, %v3510_v28 }
 0x165   :  { %v628_v22 = vrot.slane %v599_v16, %v3513_v29  ;;  %v592_v23 = vcombine.high %v590_v17, %v590_v17  ;;  %v606_v49 = vrot.slane %v590_v17, %v3510_v28  ;;  %v613_v56 = vrot.slane %v591_v18, %v3510_v28 }
 0x166   :  { %v621_v26 = vcombine.high %v599_v16, %v599_v16  ;;  %v690_v27 = vcombine.high %v688_v19, %v688_v19  ;;  %v704_v30 = vrot.slane %v688_v19, %v3510_v28  ;;  %v711_v54 = vrot.slane %v689_v20, %v3510_v28 }
 0x167   :  { %v665_v8 = vmul.f32 %v628_v22, %v3769_v62  ;;  %v620_v34 = vrot.slane %v592_v23, %v3510_v28  ;;  %v622_v55 = vcombine.high %v606_v49, %v606_v49  ;;  %v623_v9 = vcombine.high %v613_v56, %v613_v56 }
 0x168   :  { %v632_v12 = vrot.slane %v613_v56, %v3513_v29  ;;  %v636_v36 = vrot.slane %v621_v26, %v3513_v29  ;;  %v644_v37 = vrot.slane %v606_v49, %v3513_v29  ;;  %v718_v38 = vrot.slane %v690_v27, %v3510_v28 }
 0x169   :  { %v624_v57 = vcombine.high %v620_v34, %v620_v34  ;;  %v640_v10 = vrot.slane %v623_v9, %v3513_v29  ;;  %v648_v14 = vrot.slane %v620_v34, %v3513_v29  ;;  %v652_v58 = vrot.slane %v622_v55, %v3513_v29 }
 0x16a   :  { %v666_v11 = vmul.f32 %v632_v12, %v3769_v62  ;;  %v667_v42 = vmul.f32 %v636_v36, %v3769_v62  ;;  %v669_v43 = vmul.f32 %v644_v37, %v3769_v62  ;;  %v719_v45 = vcombine.high %v697_v21, %v697_v21 }
 0x16b   :  { %v656_v59 = vrot.slane %v624_v57, %v3513_v29  ;;  %v668_v60 = vmul.f32 %v640_v10, %v3769_v62  ;;  %v670_v46 = vmul.f32 %v648_v14, %v3769_v62  ;;  %v671_v61 = vmul.f32 %v652_v58, %v3769_v62 }
 0x16c   :  { %v720_v48 = vcombine.high %v704_v30, %v704_v30  ;;  %v721_v3 = vcombine.high %v711_v54, %v711_v54  ;;  %v722_v50 = vcombine.high %v718_v38, %v718_v38  ;;  %v726_v24 = vrot.slane %v697_v21, %v3513_v29 }
 0x16d   :  { %v672_v51 = vmul.f32 %v656_v59, %v3769_v62  ;;  %v730_v52 = vrot.slane %v711_v54, %v3513_v29  ;;  %v734_v53 = vrot.slane %v719_v45, %v3513_v29  ;;  %v742_v63 = vrot.slane %v704_v30, %v3513_v29 }
 0x16e   :  { %v738_v0 = vrot.slane %v721_v3, %v3513_v29  ;;  %v746_v1 = vrot.slane %v718_v38, %v3513_v29  ;;  %v750_v6 = vrot.slane %v720_v48, %v3513_v29  ;;  %v754_v2 = vrot.slane %v722_v50, %v3513_v29 }
 0x16f   :  { %v763_v4 = vadd.f32 %v726_v24, %v665_v8  ;;  %v764_v5 = vadd.f32 %v730_v52, %v666_v11  ;;  %v765_v7 = vadd.f32 %v734_v53, %v667_v42  ;;  %v767_v44 = vadd.f32 %v742_v63, %v669_v43 }
 0x170   :  { %v766_v47 = vadd.f32 %v738_v0, %v668_v60  ;;  %v768_v15 = vadd.f32 %v746_v1, %v670_v46  ;;  %v769_v16 = vadd.f32 %v750_v6, %v671_v61  ;;  %v770_v17 = vadd.f32 %v754_v2, %v672_v51 }
 0x171   :  { %v771_v18 = vmul.f32 %v3504_v25, %v763_v4  ;;  %v772_v19 = vmul.f32 %v3518_v31, %v764_v5  ;;  %v773_v20 = vmul.f32 %v3520_v32, %v765_v7  ;;  %v775_v21 = vmul.f32 %v3524_v35, %v767_v44 }
 0x172   :  { %v774_v22 = vmul.f32 %v3522_v33, %v766_v47  ;;  %v776_v23 = vmul.f32 %v3529_v39, %v768_v15  ;;  %v777_v49 = vmul.f32 %v3531_v40, %v769_v16  ;;  %v778_v56 = vmul.f32 %v3533_v41, %v770_v17 }
 0x173   :  { %v779_v26 = vmax.f32 %v771_v18, %v775_v21 }
 0x174   :  { %v780_v27 = vmax.f32 %v772_v19, %v776_v23  ;;  %v781_v30 = vmax.f32 %v773_v20, %v777_v49  ;;  %v782_v54 = vmax.f32 %v774_v22, %v778_v56 }
 0x176   :  { %v783_v8 = vmax.f32 %v779_v26, %v780_v27  ;;  %v784_v34 = vmax.f32 %v781_v30, %v782_v54 }
 0x178   :  { %v785_v55 = vmax.f32 %v783_v8, %v784_v34 }
 0x17a   :  { %v786_v9 = vsub.f32 %v771_v18, %v785_v55  ;;  %v787_v12 = vsub.f32 %v772_v19, %v785_v55  ;;  %v788_v36 = vsub.f32 %v773_v20, %v785_v55  ;;  %v789_v37 = vsub.f32 %v774_v22, %v785_v55 }
 0x17b   :  { %v790_v10 = vsub.f32 %v775_v21, %v785_v55  ;;  %v791_v58 = vsub.f32 %v776_v23, %v785_v55  ;;  %v792_v42 = vsub.f32 %v777_v49, %v785_v55  ;;  %v793_v45 = vsub.f32 %v778_v56, %v785_v55 }
 0x17c   :  { %v794_v38 = vmul.f32 1.442695, %v786_v9  ;;  %v796_v57 = vmul.f32 1.442695, %v787_v12  ;;  %v798_v14 = vmul.f32 1.442695, %v788_v36 }
 0x17d   :  { %v800_v11 = vmul.f32 1.442695, %v789_v37  ;;  %v802_v43 = vmul.f32 1.442695, %v790_v10  ;;  %v804_v59 = vmul.f32 1.442695, %v791_v58 }
 0x17e   :  { %3315 = vpow2.f32 %v794_v38  ;;  %v806_v60 = vmul.f32 1.442695, %v792_v42  ;;  %v808_v46 = vmul.f32 1.442695, %v793_v45 }
 0x17f   :  { %3317 = vpow2.f32 %v796_v57 }
 0x180   :  { %3319 = vpow2.f32 %v798_v14 }
 0x181   :  { %3321 = vpow2.f32 %v800_v11 }
 0x182   :  { %3323 = vpow2.f32 %v802_v43 }
 0x183   :  { %3325 = vpow2.f32 %v804_v59 }
 0x184   :  { %3327 = vpow2.f32 %v806_v60 }
 0x185   :  { %3329 = vpow2.f32 %v808_v46 }
 0x188   :  { %v3316_v61 = vpop.eup %3315 }
 0x189   :  { %v3318_v48 = vpop.eup %3317 }
 0x18a   :  { %v810_v3 = vadd.f32 %v3318_v48, %v3316_v61  ;;  %v3320_v50 = vpop.eup %3319 }
 0x18b   :  { %v3322_v51 = vpop.eup %3321 }
 0x18c   :  { %v811_v24 = vadd.f32 %v3320_v50, %v810_v3  ;;  %v3324_v53 = vpop.eup %3323 }
 0x18d   :  { %v3326_v0 = vpop.eup %3325 }
 0x18e   :  { %v812_v52 = vadd.f32 %v3322_v51, %v811_v24  ;;  %v3328_v6 = vpop.eup %3327 }
 0x18f   :  { %v3330_v4 = vpop.eup %3329 }
 0x190   :  { %v813_v63 = vadd.f32 %v3324_v53, %v812_v52 }
 0x192   :  { %v814_v1 = vadd.f32 %v3326_v0, %v813_v63 }
 0x194   :  { %v815_v2 = vadd.f32 %v3328_v6, %v814_v1 }
 0x196   :  { %v816_v5 = vadd.f32 %v3330_v4, %v815_v2 }
 0x198   :  { %3331 = vrcp.f32 %v816_v5 }
 0x1a2   :  { %v3332_v7 = vpop.eup %3331 }
 0x1a3   :  { %v818_v44 = vmul.f32 %v3332_v7, %v3769_v62  ;;  %v875_v24 = vmul.f32 %v3332_v7, %v3316_v61  ;;  %v876_v1 = vmul.f32 %v3332_v7, %v3318_v48  ;;  %v877_v2 = vmul.f32 %v3332_v7, %v3320_v50 }
 0x1a4   :  { %v878_v5 = vmul.f32 %v3332_v7, %v3322_v51 }
 0x1a5   :  { %v819_v47 = vmul.f32 %v3316_v61, %v818_v44  ;;  %v820_v15 = vmul.f32 %v3318_v48, %v818_v44  ;;  %v821_v16 = vmul.f32 %v3320_v50, %v818_v44  ;;  %v822_v17 = vmul.f32 %v3322_v51, %v818_v44 }
 0x1a6   :  { %v823_v18 = vmul.f32 %v3324_v53, %v818_v44  ;;  %v824_v19 = vmul.f32 %v3326_v0, %v818_v44  ;;  %v825_v20 = vmul.f32 %v3328_v6, %v818_v44  ;;  %v826_v21 = vmul.f32 %v3330_v4, %v818_v44 }
 0x1a7   :  { %v827_v22 = vrot.slane %v819_v47, 4  ;;  %v833_v23 = vrot.slane %v820_v15, 4  ;;  %v839_v49 = vrot.slane %v821_v16, 4  ;;  %v845_v56 = vrot.slane %v822_v17, 4 }
 0x1a8   :  { %v851_v26 = vrot.slane %v823_v18, 4  ;;  %v857_v27 = vrot.slane %v824_v19, 4  ;;  %v863_v30 = vrot.slane %v825_v20, 4  ;;  %v869_v54 = vrot.slane %v826_v21, 4 }
 0x1a9   :  { %v828_v8 = vadd.f32 %v827_v22, %v819_v47  ;;  %v834_v34 = vadd.f32 %v833_v23, %v820_v15  ;;  %v840_v55 = vadd.f32 %v839_v49, %v821_v16  ;;  %v846_v62 = vadd.f32 %v845_v56, %v822_v17 }
 0x1aa   :  { %v852_v9 = vadd.f32 %v851_v26, %v823_v18  ;;  %v858_v12 = vadd.f32 %v857_v27, %v824_v19  ;;  %v864_v36 = vadd.f32 %v863_v30, %v825_v20  ;;  %v870_v37 = vadd.f32 %v869_v54, %v826_v21 }
 0x1ab   :  { %v829_v38 = vrot.slane %v828_v8, 2  ;;  %v835_v57 = vrot.slane %v834_v34, 2  ;;  %v841_v10 = vrot.slane %v840_v55, 2  ;;  %v847_v14 = vrot.slane %v846_v62, 2 }
 0x1ac   :  { %v853_v58 = vrot.slane %v852_v9, 2  ;;  %v859_v11 = vrot.slane %v858_v12, 2  ;;  %v865_v42 = vrot.slane %v864_v36, 2  ;;  %v871_v60 = vrot.slane %v870_v37, 2 }
 0x1ad   :  { %v830_v43 = vadd.f32 %v829_v38, %v828_v8  ;;  %v836_v45 = vadd.f32 %v835_v57, %v834_v34  ;;  %v842_v59 = vadd.f32 %v841_v10, %v840_v55  ;;  %v3818_v46 = vadd.f32 %v847_v14, %v846_v62 }
 0x1ae   :  { %v3820_v3 = vadd.f32 %v853_v58, %v852_v9  ;;  %v879_v44 = vmul.f32 %v3332_v7, %v3324_v53  ;;  %v880_v47 = vmul.f32 %v3332_v7, %v3326_v0  ;;  %v881_v15 = vmul.f32 %v3332_v7, %v3328_v6 }
 0x1af   :  { %v831_v52 = vrot.slane %v830_v43, 1  ;;  %v837_v63 = vrot.slane %v836_v45, 1  ;;  %v843_v16 = vrot.slane %v842_v59, 1  ;;  %v3822_v17 = vadd.f32 %v859_v11, %v858_v12 }
 0x1b0   :  { %v3824_v18 = vadd.f32 %v865_v42, %v864_v36  ;;  %v3826_v19 = vadd.f32 %v871_v60, %v870_v37  ;;  %v849_v22 = vrot.slane %v3818_v46, 1  ;;  %v855_v61 = vrot.slane %v3820_v3, 1 }
 0x1b1   :  { %v832_v20 = vadd.f32 %v831_v52, %v830_v43  ;;  %v838_v21 = vadd.f32 %v837_v63, %v836_v45  ;;  %v882_v23 = vmul.f32 %v3332_v7, %v3330_v4  ;;  %v883_v48 = vrot.slane %v875_v24, 4 }
 0x1b2   :  { %v889_v50 = vrot.slane %v876_v1, 4  ;;  %v895_v51 = vrot.slane %v877_v2, 4  ;;  %v901_v53 = vrot.slane %v878_v5, 4  ;;  %v907_v0 = vrot.slane %v879_v44, 4 }
 0x1b3   :  { %v913_v6 = vrot.slane %v880_v47, 4  ;;  %v919_v49 = vrot.slane %v881_v15, 4  ;;  %v884_v56 = vadd.f32 %v883_v48, %v875_v24  ;;  %v925_v30 = vrot.slane %v882_v23, 4 }
 0x1b4   :  { %v890_v26 = vadd.f32 %v889_v50, %v876_v1  ;;  %v896_v27 = vadd.f32 %v895_v51, %v877_v2  ;;  %v902_v54 = vadd.f32 %v901_v53, %v878_v5  ;;  %v908_v8 = vadd.f32 %v907_v0, %v879_v44 }
 0x1b5   :  { %v914_v34 = vadd.f32 %v913_v6, %v880_v47  ;;  %v920_v55 = vadd.f32 %v919_v49, %v881_v15  ;;  %v885_v62 = vrot.slane %v884_v56, 2  ;;  %v926_v36 = vadd.f32 %v925_v30, %v882_v23 }
 0x1b6   :  { %v891_v9 = vrot.slane %v890_v26, 2  ;;  %v897_v12 = vrot.slane %v896_v27, 2  ;;  %v903_v4 = vrot.slane %v902_v54, 2  ;;  %v909_v7 = vrot.slane %v908_v8, 2 }
 0x1b7   :  { %v915_v37 = vrot.slane %v914_v34, 2  ;;  %v921_v38 = vrot.slane %v920_v55, 2  ;;  %v886_v57 = vadd.f32 %v885_v62, %v884_v56  ;;  %v927_v58 = vrot.slane %v926_v36, 2 }
 0x1b8   :  { %v892_v10 = vadd.f32 %v891_v9, %v890_v26  ;;  %v898_v14 = vadd.f32 %v897_v12, %v896_v27  ;;  %v904_v11 = vadd.f32 %v903_v4, %v902_v54  ;;  %v910_v42 = vadd.f32 %v909_v7, %v908_v8  ;;  %v2819_v7 = vld [vmem:[%s4478_s4 + $0x8] sm:$0xff] }
 0x1b9   :  { %v916_v43 = vadd.f32 %v915_v37, %v914_v34  ;;  %v922_v45 = vadd.f32 %v921_v38, %v920_v55  ;;  %v887_v60 = vrot.slane %v886_v57, 1  ;;  %v928_v63 = vadd.f32 %v927_v58, %v926_v36  ;;  %v1576_v37 = vld [vmem:[%s4481_s7 + $0x80] sm:$0xff] }
 0x1ba   :  { %v893_v24 = vrot.slane %v892_v10, 1  ;;  %v899_v52 = vrot.slane %v898_v14, 1  ;;  %v844_v1 = vadd.f32 %v843_v16, %v842_v59  ;;  %v861_v2 = vrot.slane %v3822_v17, 1  ;;  %v1560_v38 = vld [vmem:[%s4481_s7] sm:$0xff] }
 0x1bb   :  { %v905_v5 = vrot.slane %v904_v11, 1  ;;  %v911_v44 = vrot.slane %v910_v42, 1  ;;  %v888_v47 = vadd.f32 %v887_v60, %v886_v57  ;;  %v917_v48 = vrot.slane %v916_v43, 1  ;;  %v1578_v57 = vld [vmem:[%s4481_s7 + $0x90] sm:$0xff]  ;;  %v1564_v58 = vld [vmem:[%s4481_s7 + $0x20] sm:$0xff] }
 0x1bc   :  { %v894_v15 = vadd.f32 %v893_v24, %v892_v10  ;;  %v900_v23 = vadd.f32 %v899_v52, %v898_v14  ;;  %v850_v50 = vadd.f32 %v849_v22, %v3818_v46  ;;  %v867_v51 = vrot.slane %v3824_v18, 1  ;;  %v1562_v10 = vld [vmem:[%s4481_s7 + $0x10] sm:$0xff]  ;;  %v1580_v14 = vld [vmem:[%s4481_s7 + $0xa0] sm:$0xff] }
 0x1bd   :  { %v873_v53 = vrot.slane %v3826_v19, 1  ;;  %v923_v0 = vrot.slane %v922_v45, 1  ;;  %v906_v6 = vadd.f32 %v905_v5, %v904_v11  ;;  %v929_v49 = vrot.slane %v928_v63, 1  ;;  %v1582_v11 = vld [vmem:[%s4481_s7 + $0xb0] sm:$0xff]  ;;  %v1588_v52 = vld [vmem:[%s4481_s7 + $0xe0] sm:$0xff]  ;;  %v970_v5 = vpop.permute.xlu0 %969 }
 0x1be   :  { %v939_v56 = vsel %vm451_vm1, %v838_v21, %v832_v20  ;;  %v955_v59 = vsel %vm451_vm1, %v894_v15, %v888_v47  ;;  %v856_v16 = vadd.f32 %v855_v61, %v3820_v3  ;;  %v912_v26 = vadd.f32 %v911_v44, %v910_v42  ;;  %v1566_v42 = vld [vmem:[%s4481_s7 + $0x30] sm:$0xff] }
 0x1bf   :  { %v940_v27 = vsel %vm453_vm2, %v844_v1, %v939_v56  ;;  %v956_v30 = vsel %vm453_vm2, %v900_v23, %v955_v59  ;;  %v862_v46 = vadd.f32 %v861_v2, %v3822_v17  ;;  %v918_v22 = vadd.f32 %v917_v48, %v916_v43  ;;  %v1584_v43 = vld [vmem:[%s4481_s7 + $0xc0] sm:$0xff]  ;;  %v1586_v60 = vld [vmem:[%s4481_s7 + $0xd0] sm:$0xff] }
 0x1c0   :  { %v941_v54 = vsel %vm455_vm3, %v850_v50, %v940_v27  ;;  %v957_v8 = vsel %vm455_vm3, %v906_v6, %v956_v30  ;;  %v868_v34 = vadd.f32 %v867_v51, %v3824_v18  ;;  %v924_v55 = vadd.f32 %v923_v0, %v922_v45  ;;  %v1568_v45 = vld [vmem:[%s4481_s7 + $0x40] sm:$0xff]  ;;  %v1570_v24 = vld [vmem:[%s4481_s7 + $0x50] sm:$0xff] }
 0x1c1   :  { %v942_v20 = vsel %vm457_vm4, %v856_v16, %v941_v54  ;;  %v958_v21 = vsel %vm457_vm4, %v912_v26, %v957_v8  ;;  %v874_v3 = vadd.f32 %v873_v53, %v3826_v19  ;;  %v930_v61 = vadd.f32 %v929_v49, %v928_v63  ;;  %v2827_v19 = vld [vmem:[%s4479_s5 + $0x10] sm:$0xff]  ;;  %v1572_v63 = vld [vmem:[%s4481_s7 + $0x60] sm:$0xff] }
 0x1c2   :  { %v943_v62 = vsel %vm459_vm5, %v862_v46, %v942_v20  ;;  %v959_v9 = vsel %vm459_vm5, %v918_v22, %v958_v21  ;;  %1451 = vperm.xlu1 %3248, %v2827_v19   ;;  %v1590_v1 = vld [vmem:[%s4481_s7 + $0xf0] sm:$0xff]  ;;  %v1049_v47 = vstv %s2822_s17  ;;  %v1053_v15 = vstv %s2823_s18  ;;  %v2174_v23 = vld [vmem:[%s4483_s9 + $0x80] sm:$0xff] }
 0x1c3   :  { %v944_v17 = vsel %vm461_vm6, %v868_v34, %v943_v62  ;;  %v960_v12 = vsel %vm461_vm6, %v924_v55, %v959_v9  ;;  %v1574_v2 = vld [vmem:[%s4481_s7 + $0x70] sm:$0xff]  ;;  %v1051_v51 = vstv %s2824_s20  ;;  %v1055_v53 = vstv %s2825_s21  ;;  %v2158_v49 = vld [vmem:[%s4483_s9] sm:$0xff] }
 0x1c4   :  { %v945_v36 = vsel %vm463_vm7, %v874_v3, %v944_v17  ;;  %v961_v18 = vsel %vm463_vm7, %v930_v61, %v960_v12  ;;  %v2176_v46 = vld [vmem:[%s4483_s9 + $0x90] sm:$0xff] }
 0x1c5   :  { %v3180_v4 = vpack.c.bf16 %v961_v18, %v945_v36  ;;  %v2160_v18 = vld [vmem:[%s4483_s9 + $0x10] sm:$0xff] }
 0x1c6   :  { %1674 = vperm.xlu1 %3248, %v1576_v37  }
 0x1c7   :  { %3181 = vmatpush3.bf16.msra.mxu1 %v3180_v4 }
 0x1ca   :  { %3115 = vmatmul.mubr.msk.f32.vlgmr.msra.gmra.mrb[2].mxu1 %vm489_vm8, %v2819_v7  ;;  %1594 = vperm.xlu1 %3248, %v1560_v38  }
 0x1ce   :  { %1684 = vperm.xlu1 %3248, %v1578_v57  }
 0x1d2   :  { %1604 = vperm.xlu1 %3248, %v1562_v10  }
 0x1d6   :  { %1694 = vperm.xlu1 %3248, %v1580_v14  }
 0x1da   :  { %1614 = vperm.xlu1 %3248, %v1564_v58  }
 0x1de   :  { %1704 = vperm.xlu1 %3248, %v1582_v11  }
 0x1e2   :  { %1624 = vperm.xlu1 %3248, %v1566_v42  }
 0x1e6   :  { %1714 = vperm.xlu1 %3248, %v1584_v43  }
 0x1ea   :  { %1634 = vperm.xlu1 %3248, %v1568_v45  }
 0x1ee   :  { %1724 = vperm.xlu1 %3248, %v1586_v60  }
 0x1f2   :  { %1644 = vperm.xlu1 %3248, %v1570_v24  }
 0x1f6   :  { %1734 = vperm.xlu1 %3248, %v1588_v52  }
 0x1fa   :  { %1654 = vperm.xlu1 %3248, %v1572_v63   ;;  %v2178_v63 = vld [vmem:[%s4483_s9 + $0xa0] sm:$0xff] }
 0x1fe   :  { %1744 = vperm.xlu1 %3248, %v1590_v1  }
 0x202   :  { %1664 = vperm.xlu1 %3248, %v1574_v2  }
 0x206   :  { %2272 = vperm.xlu1 %3248, %v2174_v23  }
 0x20a   :  { %2192 = vperm.xlu1 %3248, %v2158_v49  }
 0x20e   :  { %2282 = vperm.xlu1 %3248, %v2176_v46  }
 0x212   :  { %2202 = vperm.xlu1 %3248, %v2160_v18  }
 0x216   :  { %2292 = vperm.xlu1 %3248, %v2178_v63   ;;  %v2168_v63 = vld [vmem:[%s4483_s9 + $0x50] sm:$0xff] }
 0x29d   :  { %v1041_v44 = vpop.f32.mrb[2].mxu1 }
 0x29e   :  { %v3910_v48 = vadd.f32 %v1041_v44, %v970_v5  ;;  %v3116_v50 = vpop.f32.mrb[3].mxu1 }
 0x2a0   :  { %v1050_v0 = vmul.f32 %v1049_v47, %v3910_v48  ;;  %v1054_v6 = vmul.f32 %v1053_v15, %v3910_v48 }
 0x2a2   :  { %v1052_v56 = vadd.f32 %v1051_v51, %v1050_v0  ;;  %v1056_v59 = vadd.f32 %v1055_v53, %v1054_v6 }
 0x2a4   :  { %v1058_v16 = vcombine.high %v1052_v56, %v1052_v56  ;;  %v1065_v26 = vrot.slane %v1052_v56, %v3510_v28  ;;  %v1156_v27 = vcombine.high %v1056_v59, %v1056_v59  ;;  %v1163_v30 = vrot.slane %v1056_v59, %v3510_v28 }
 0x2a6   :  { %v1072_v22 = vrot.slane %v1058_v16, %v3510_v28  ;;  %v1073_v54 = vcombine.high %v1065_v26, %v1065_v26  ;;  %v1081_v8 = vrot.slane %v1065_v26, %v3510_v28  ;;  %v1170_v34 = vrot.slane %v1156_v27, %v3510_v28  ;;  %v2162_v16 = vld [vmem:[%s4483_s9 + $0x20] sm:$0xff] }
 0x2a7   :  { %v1171_v55 = vcombine.high %v1163_v30, %v1163_v30  ;;  %v1179_v20 = vrot.slane %v1163_v30, %v3510_v28  ;;  %2212 = vperm.xlu1 %3248, %v2162_v16  }
 0x2a8   :  { %v1074_v21 = vcombine.high %v1072_v22, %v1072_v22  ;;  %v1088_v3 = vrot.slane %v1072_v22, %v3510_v28  ;;  %v1095_v61 = vrot.slane %v1073_v54, %v3510_v28  ;;  %v1103_v62 = vcombine.high %v1081_v8, %v1081_v8 }
 0x2a9   :  { %v1110_v9 = vrot.slane %v1081_v8, %v3513_v29  ;;  %v1172_v17 = vcombine.high %v1170_v34, %v1170_v34  ;;  %v1186_v12 = vrot.slane %v1170_v34, %v3510_v28  ;;  %v1193_v36 = vrot.slane %v1171_v55, %v3510_v28 }
 0x2aa   :  { %v1102_v4 = vrot.slane %v1074_v21, %v3510_v28  ;;  %v1104_v7 = vcombine.high %v1088_v3, %v1088_v3  ;;  %v1105_v19 = vcombine.high %v1095_v61, %v1095_v61  ;;  %v1114_v37 = vrot.slane %v1095_v61, %v3513_v29 }
 0x2ab   :  { %v1118_v38 = vrot.slane %v1103_v62, %v3513_v29  ;;  %v1126_v57 = vrot.slane %v1088_v3, %v3513_v29  ;;  %v1147_v10 = vmul.f32 %v1110_v9, %v3910_v48  ;;  %v1200_v14 = vrot.slane %v1172_v17, %v3510_v28 }
 0x2ac   :  { %v1106_v58 = vcombine.high %v1102_v4, %v1102_v4  ;;  %v1122_v11 = vrot.slane %v1105_v19, %v3513_v29  ;;  %v1130_v42 = vrot.slane %v1102_v4, %v3513_v29  ;;  %v1134_v43 = vrot.slane %v1104_v7, %v3513_v29  ;;  %v2182_v7 = vld [vmem:[%s4483_s9 + $0xc0] sm:$0xff] }
 0x2ad   :  { %v1148_v45 = vmul.f32 %v1114_v37, %v3910_v48  ;;  %v1149_v60 = vmul.f32 %v1118_v38, %v3910_v48  ;;  %v1151_v24 = vmul.f32 %v1126_v57, %v3910_v48  ;;  %v1201_v52 = vcombine.high %v1179_v20, %v1179_v20 }
 0x2ae   :  { %v1138_v28 = vrot.slane %v1106_v58, %v3513_v29  ;;  %v1150_v1 = vmul.f32 %v1122_v11, %v3910_v48  ;;  %v1152_v2 = vmul.f32 %v1130_v42, %v3910_v48  ;;  %v1153_v5 = vmul.f32 %v1134_v43, %v3910_v48 }
 0x2af   :  { %v1202_v44 = vcombine.high %v1186_v12, %v1186_v12  ;;  %v1203_v47 = vcombine.high %v1193_v36, %v1193_v36  ;;  %v1204_v15 = vcombine.high %v1200_v14, %v1200_v14  ;;  %v1208_v23 = vrot.slane %v1179_v20, %v3513_v29 }
 0x2b0   :  { %v1154_v50 = vmul.f32 %v1138_v28, %v3910_v48  ;;  %v1212_v51 = vrot.slane %v1193_v36, %v3513_v29  ;;  %v1216_v53 = vrot.slane %v1201_v52, %v3513_v29  ;;  %v1224_v0 = vrot.slane %v1186_v12, %v3513_v29  ;;  %v2180_v12 = vld [vmem:[%s4483_s9 + $0xb0] sm:$0xff] }
 0x2b1   :  { %v1220_v6 = vrot.slane %v1203_v47, %v3513_v29  ;;  %v1228_v49 = vrot.slane %v1200_v14, %v3513_v29  ;;  %v1232_v56 = vrot.slane %v1202_v44, %v3513_v29  ;;  %v1236_v59 = vrot.slane %v1204_v15, %v3513_v29  ;;  %2302 = vperm.xlu1 %3248, %v2180_v12   ;;  %v2166_v14 = vld [vmem:[%s4483_s9 + $0x40] sm:$0xff] }
 0x2b2   :  { %v1245_v26 = vadd.f32 %v1208_v23, %v1147_v10  ;;  %v1246_v27 = vadd.f32 %v1212_v51, %v1148_v45  ;;  %v1247_v30 = vadd.f32 %v1216_v53, %v1149_v60  ;;  %v1249_v46 = vadd.f32 %v1224_v0, %v1151_v24  ;;  %v2184_v45 = vld [vmem:[%s4483_s9 + $0xd0] sm:$0xff]  ;;  %v2186_v44 = vld [vmem:[%s4483_s9 + $0xe0] sm:$0xff] }
 0x2b3   :  { %v1248_v22 = vadd.f32 %v1220_v6, %v1150_v1  ;;  %v1250_v54 = vadd.f32 %v1228_v49, %v1152_v2  ;;  %v1251_v8 = vadd.f32 %v1232_v56, %v1153_v5  ;;  %v1252_v34 = vadd.f32 %v1236_v59, %v1154_v50  ;;  %v2170_v51 = vld [vmem:[%s4483_s9 + $0x60] sm:$0xff]  ;;  %v2188_v56 = vld [vmem:[%s4483_s9 + $0xf0] sm:$0xff] }
 0x2b4   :  { %v1253_v55 = vmul.f32 %v3504_v25, %v1245_v26  ;;  %v1254_v20 = vmul.f32 %v3518_v31, %v1246_v27  ;;  %v1255_v21 = vmul.f32 %v3520_v32, %v1247_v30  ;;  %v1257_v3 = vmul.f32 %v3524_v35, %v1249_v46  ;;  %v2172_v30 = vld [vmem:[%s4483_s9 + $0x70] sm:$0xff]  ;;  %v2704_v46 = vld [vmem:[#allocation2] sm:$0x1] }
 0x2b5   :  { %v1256_v61 = vmul.f32 %v3522_v33, %v1248_v22  ;;  %v1258_v62 = vmul.f32 %v3529_v39, %v1250_v54  ;;  %v1259_v9 = vmul.f32 %v3531_v40, %v1251_v8  ;;  %v1260_v17 = vmul.f32 %v3533_v41, %v1252_v34  ;;  %v2164_v33 = vld [vmem:[%s4483_s9 + $0x30] sm:$0xff] }
 0x2b6   :  { %v1261_v25 = vmax.f32 %v1253_v55, %v1257_v3  ;;  %2222 = vperm.xlu1 %3248, %v2164_v33  }
 0x2b7   :  { %v1262_v36 = vmax.f32 %v1254_v20, %v1258_v62  ;;  %v1263_v31 = vmax.f32 %v1255_v21, %v1259_v9  ;;  %v1264_v18 = vmax.f32 %v1256_v61, %v1260_v17 }
 0x2b9   :  { %v1265_v32 = vmax.f32 %v1261_v25, %v1262_v36  ;;  %v1266_v35 = vmax.f32 %v1263_v31, %v1264_v18 }
 0x2ba   :  { %2312 = vperm.xlu1 %3248, %v2182_v7  }
 0x2bb   :  { %v1267_v39 = vmax.f32 %v1265_v32, %v1266_v35 }
 0x2bd   :  { %v1268_v40 = vsub.f32 %v1253_v55, %v1267_v39  ;;  %v1269_v4 = vsub.f32 %v1254_v20, %v1267_v39  ;;  %v1270_v41 = vsub.f32 %v1255_v21, %v1267_v39  ;;  %v1271_v19 = vsub.f32 %v1256_v61, %v1267_v39 }
 0x2be   :  { %v1272_v57 = vsub.f32 %v1257_v3, %v1267_v39  ;;  %v1273_v58 = vsub.f32 %v1258_v62, %v1267_v39  ;;  %v1274_v42 = vsub.f32 %v1259_v9, %v1267_v39  ;;  %2232 = vperm.xlu1 %3248, %v2166_v14   ;;  %v1275_v60 = vsub.f32 %v1260_v17, %v1267_v39 }
 0x2bf   :  { %v1276_v37 = vmul.f32 1.442695, %v1268_v40  ;;  %v1278_v38 = vmul.f32 1.442695, %v1269_v4  ;;  %v1280_v10 = vmul.f32 1.442695, %v1270_v41 }
 0x2c0   :  { %v1282_v11 = vmul.f32 1.442695, %v1271_v19  ;;  %v1284_v43 = vmul.f32 1.442695, %v1272_v57  ;;  %v1286_v24 = vmul.f32 1.442695, %v1273_v58 }
 0x2c1   :  { %3333 = vpow2.f32 %v1276_v37  ;;  %v1288_v52 = vmul.f32 1.442695, %v1274_v42  ;;  %v1290_v28 = vmul.f32 1.442695, %v1275_v60 }
 0x2c2   :  { %3335 = vpow2.f32 %v1278_v38  ;;  %2322 = vperm.xlu1 %3248, %v2184_v45  }
 0x2c3   :  { %3337 = vpow2.f32 %v1280_v10 }
 0x2c4   :  { %3339 = vpow2.f32 %v1282_v11 }
 0x2c5   :  { %3341 = vpow2.f32 %v1284_v43 }
 0x2c6   :  { %3343 = vpow2.f32 %v1286_v24  ;;  %2242 = vperm.xlu1 %3248, %v2168_v63  }
 0x2c7   :  { %3345 = vpow2.f32 %v1288_v52 }
 0x2c8   :  { %3347 = vpow2.f32 %v1290_v28 }
 0x2ca   :  { %2332 = vperm.xlu1 %3248, %v2186_v44  }
 0x2cb   :  { %v3991_v1 = vpop.eup %3333 }
 0x2cc   :  { %v3993_v2 = vpop.eup %3335 }
 0x2cd   :  { %v1292_v5 = vadd.f32 %v3993_v2, %v3991_v1  ;;  %v4000_v47 = vpop.eup %3337 }
 0x2ce   :  { %v4003_v23 = vpop.eup %3339  ;;  %2252 = vperm.xlu1 %3248, %v2170_v51  }
 0x2cf   :  { %v1293_v15 = vadd.f32 %v4000_v47, %v1292_v5  ;;  %v3342_v53 = vpop.eup %3341 }
 0x2d0   :  { %v3344_v6 = vpop.eup %3343 }
 0x2d1   :  { %v1294_v50 = vadd.f32 %v4003_v23, %v1293_v15  ;;  %v3346_v59 = vpop.eup %3345 }
 0x2d2   :  { %v4012_v26 = vpop.eup %3347  ;;  %2342 = vperm.xlu1 %3248, %v2188_v56  }
 0x2d3   :  { %v1295_v0 = vadd.f32 %v3342_v53, %v1294_v50 }
 0x2d5   :  { %v1296_v49 = vadd.f32 %v3344_v6, %v1295_v0 }
 0x2d6   :  { %2262 = vperm.xlu1 %3248, %v2172_v30  }
 0x2d7   :  { %v1297_v16 = vadd.f32 %v3346_v59, %v1296_v49 }
 0x2d9   :  { %v1298_v27 = vadd.f32 %v4012_v26, %v1297_v16 }
 0x2da   :  { %2707 = vperm.xlu1 %3248, %v2704_v46  }
 0x2db   :  { %3349 = vrcp.f32 %v1298_v27 }
 0x2e5   :  { %v3350_v22 = vpop.eup %3349 }
 0x2e6   :  { %v1300_v54 = vmul.f32 %v3350_v22, %v3910_v48  ;;  %v1357_v52 = vmul.f32 %v3350_v22, %v3991_v1  ;;  %v1358_v5 = vmul.f32 %v3350_v22, %v3993_v2  ;;  %v1359_v44 = vmul.f32 %v3350_v22, %v4000_v47 }
 0x2e7   :  { %v1360_v15 = vmul.f32 %v3350_v22, %v4003_v23  ;;  %v1361_v50 = vmul.f32 %v3350_v22, %v3342_v53  ;;  %v1362_v51 = vmul.f32 %v3350_v22, %v3344_v6  ;;  %v1363_v0 = vmul.f32 %v3350_v22, %v3346_v59 }
 0x2e8   :  { %v1301_v8 = vmul.f32 %v3991_v1, %v1300_v54  ;;  %v1302_v34 = vmul.f32 %v3993_v2, %v1300_v54  ;;  %v1303_v55 = vmul.f32 %v4000_v47, %v1300_v54  ;;  %v1304_v20 = vmul.f32 %v4003_v23, %v1300_v54 }
 0x2e9   :  { %v1305_v21 = vmul.f32 %v3342_v53, %v1300_v54  ;;  %v1306_v3 = vmul.f32 %v3344_v6, %v1300_v54  ;;  %v1307_v61 = vmul.f32 %v3346_v59, %v1300_v54  ;;  %v1308_v62 = vmul.f32 %v4012_v26, %v1300_v54 }
 0x2ea   :  { %v1309_v9 = vrot.slane %v1301_v8, 4  ;;  %v1315_v17 = vrot.slane %v1302_v34, 4  ;;  %v1321_v12 = vrot.slane %v1303_v55, 4  ;;  %v1327_v25 = vrot.slane %v1304_v20, 4 }
 0x2eb   :  { %v1333_v36 = vrot.slane %v1305_v21, 4  ;;  %v1339_v31 = vrot.slane %v1306_v3, 4  ;;  %v1345_v48 = vrot.slane %v1307_v61, 4  ;;  %v1351_v18 = vrot.slane %v1308_v62, 4 }
 0x2ec   :  { %v1310_v32 = vadd.f32 %v1309_v9, %v1301_v8  ;;  %v1316_v35 = vadd.f32 %v1315_v17, %v1302_v34  ;;  %v1322_v33 = vadd.f32 %v1321_v12, %v1303_v55  ;;  %v1328_v39 = vadd.f32 %v1327_v25, %v1304_v20 }
 0x2ed   :  { %v1334_v40 = vadd.f32 %v1333_v36, %v1305_v21  ;;  %v1340_v4 = vadd.f32 %v1339_v31, %v1306_v3  ;;  %v1346_v41 = vadd.f32 %v1345_v48, %v1307_v61  ;;  %v1352_v7 = vadd.f32 %v1351_v18, %v1308_v62 }
 0x2ee   :  { %v1311_v19 = vrot.slane %v1310_v32, 2  ;;  %v1317_v37 = vrot.slane %v1316_v35, 2  ;;  %v1323_v38 = vrot.slane %v1322_v33, 2  ;;  %v1329_v57 = vrot.slane %v1328_v39, 2 }
 0x2ef   :  { %v1335_v10 = vrot.slane %v1334_v40, 2  ;;  %v1341_v14 = vrot.slane %v1340_v4, 2  ;;  %v1347_v58 = vrot.slane %v1346_v41, 2  ;;  %v1353_v45 = vrot.slane %v1352_v7, 2 }
 0x2f0   :  { %v1312_v11 = vadd.f32 %v1311_v19, %v1310_v32  ;;  %v1318_v42 = vadd.f32 %v1317_v37, %v1316_v35  ;;  %v1324_v43 = vadd.f32 %v1323_v38, %v1322_v33  ;;  %v4024_v60 = vadd.f32 %v1329_v57, %v1328_v39 }
 0x2f1   :  { %v4026_v24 = vadd.f32 %v1335_v10, %v1334_v40  ;;  %v4032_v56 = vadd.f32 %v1341_v14, %v1340_v4  ;;  %v4034_v16 = vadd.f32 %v1347_v58, %v1346_v41  ;;  %v4036_v27 = vadd.f32 %v1353_v45, %v1352_v7 }
 0x2f2   :  { %v1313_v63 = vrot.slane %v1312_v11, 1  ;;  %v1319_v28 = vrot.slane %v1318_v42, 1  ;;  %v1325_v49 = vrot.slane %v1324_v43, 1  ;;  %v1331_v46 = vrot.slane %v4024_v60, 1 }
 0x2f3   :  { %v1337_v2 = vrot.slane %v4026_v24, 1  ;;  %v1364_v47 = vmul.f32 %v3350_v22, %v4012_v26  ;;  %v1365_v54 = vrot.slane %v1357_v52, 4  ;;  %v1371_v23 = vrot.slane %v1358_v5, 4 }
 0x2f4   :  { %v1314_v30 = vadd.f32 %v1313_v63, %v1312_v11  ;;  %v1320_v1 = vadd.f32 %v1319_v28, %v1318_v42  ;;  %v1377_v53 = vrot.slane %v1359_v44, 4  ;;  %v1383_v6 = vrot.slane %v1360_v15, 4 }
 0x2f5   :  { %v1389_v59 = vrot.slane %v1361_v50, 4  ;;  %v1395_v8 = vrot.slane %v1362_v51, 4  ;;  %v1401_v34 = vrot.slane %v1363_v0, 4  ;;  %v1366_v55 = vadd.f32 %v1365_v54, %v1357_v52 }
 0x2f6   :  { %v1372_v20 = vadd.f32 %v1371_v23, %v1358_v5  ;;  %v1378_v21 = vadd.f32 %v1377_v53, %v1359_v44  ;;  %v1407_v3 = vrot.slane %v1364_v47, 4  ;;  %v1384_v61 = vadd.f32 %v1383_v6, %v1360_v15 }
 0x2f7   :  { %v1390_v62 = vadd.f32 %v1389_v59, %v1361_v50  ;;  %v1396_v9 = vadd.f32 %v1395_v8, %v1362_v51  ;;  %v1402_v17 = vadd.f32 %v1401_v34, %v1363_v0  ;;  %v1367_v12 = vrot.slane %v1366_v55, 2 }
 0x2f8   :  { %v1373_v25 = vrot.slane %v1372_v20, 2  ;;  %v1379_v36 = vrot.slane %v1378_v21, 2  ;;  %v1408_v31 = vadd.f32 %v1407_v3, %v1364_v47  ;;  %v1385_v26 = vrot.slane %v1384_v61, 2 }
 0x2f9   :  { %v1391_v22 = vrot.slane %v1390_v62, 2  ;;  %v1397_v48 = vrot.slane %v1396_v9, 2  ;;  %v1403_v18 = vrot.slane %v1402_v17, 2  ;;  %v1368_v32 = vadd.f32 %v1367_v12, %v1366_v55 }
 0x2fa   :  { %v1374_v35 = vadd.f32 %v1373_v25, %v1372_v20  ;;  %v1380_v33 = vadd.f32 %v1379_v36, %v1378_v21  ;;  %v1409_v39 = vrot.slane %v1408_v31, 2  ;;  %v1386_v40 = vadd.f32 %v1385_v26, %v1384_v61  ;;  %v2826_v61 = vld [vmem:[%s4478_s4 + $0x10] sm:$0xff] }
 0x2fb   :  { %v1392_v4 = vadd.f32 %v1391_v22, %v1390_v62  ;;  %v1398_v41 = vadd.f32 %v1397_v48, %v1396_v9  ;;  %v1404_v7 = vadd.f32 %v1403_v18, %v1402_v17  ;;  %v1369_v19 = vrot.slane %v1368_v32, 1  ;;  %v1452_v62 = vpop.permute.xlu1 %1451  ;;  %v1527_v17 = vld [vmem:[%s4476_s2] sm:$0xf]  ;;  %v1530_v26 = vld [vmem:[%s4480_s6 + $0x10] sm:$0xff]  ;;  %v1531_v22 = vld [vmem:[%s4480_s6 + $0x18] sm:$0xff] }
 0x2fc   :  { %v1375_v37 = vrot.slane %v1374_v35, 1  ;;  %v1381_v38 = vrot.slane %v1380_v33, 1  ;;  %v1410_v57 = vadd.f32 %v1409_v39, %v1408_v31  ;;  %v1326_v10 = vadd.f32 %v1325_v49, %v1324_v43  ;;  %v1529_v31 = vld [vmem:[%s4480_s6 + $0x8] sm:$0xff]  ;;  %v1532_v48 = vld [vmem:[%s4480_s6 + $0x20] sm:$0xff] }
 0x2fd   :  { %v1343_v14 = vrot.slane %v4032_v56, 1  ;;  %v1387_v58 = vrot.slane %v1386_v40, 1  ;;  %v1393_v11 = vrot.slane %v1392_v4, 1  ;;  %v1370_v42 = vadd.f32 %v1369_v19, %v1368_v32  ;;  %v1533_v18 = vld [vmem:[%s4480_s6 + $0x28] sm:$0xff]  ;;  %v1534_v32 = vld [vmem:[%s4480_s6 + $0x30] sm:$0xff] }
 0x2fe   :  { %v1376_v45 = vadd.f32 %v1375_v37, %v1374_v35  ;;  %v1382_v52 = vadd.f32 %v1381_v38, %v1380_v33  ;;  %v1399_v63 = vrot.slane %v1398_v41, 1  ;;  %v1332_v28 = vadd.f32 %v1331_v46, %v4024_v60  ;;  %v1535_v35 = vld [vmem:[%s4480_s6 + $0x38] sm:$0xff]  ;;  %v1536_v33 = vld [vmem:[%s4480_s6 + $0x40] sm:$0xff]  ;;  %v1537_v39 = vld [vmem:[%s4480_s6 + $0x48] sm:$0xff] }
 0x2ff   :  { %v1349_v5 = vrot.slane %v4034_v16, 1  ;;  %v1355_v44 = vrot.slane %v4036_v27, 1  ;;  %v1405_v15 = vrot.slane %v1404_v7, 1  ;;  %v1388_v50 = vadd.f32 %v1387_v58, %v1386_v40  ;;  %v1538_v40 = vld [vmem:[%s4480_s6 + $0x50] sm:$0xff]  ;;  %v1543_v37 = vld [vmem:[%s4480_s6 + $0x78] sm:$0xff]  ;;  %v1544_v38 = vld [vmem:[%s4480_s6 + $0x80] sm:$0xff] }
 0x300   :  { %v1411_v51 = vrot.slane %v1410_v57, 1  ;;  %v1421_v0 = vsel %vm451_vm1, %v1320_v1, %v1314_v30  ;;  %v1437_v43 = vsel %vm451_vm1, %v1376_v45, %v1370_v42  ;;  %v1338_v49 = vadd.f32 %v1337_v2, %v4026_v24  ;;  %v1542_v19 = vld [vmem:[%s4480_s6 + $0x70] sm:$0xff]  ;;  %v1548_v58 = vld [vmem:[%s4480_s6 + $0xa0] sm:$0xff]  ;;  %v1551_v45 = vld [vmem:[%s4480_s6 + $0xb8] sm:$0xff] }
 0x301   :  { %v1394_v47 = vadd.f32 %v1393_v11, %v1392_v4  ;;  %v1422_v54 = vsel %vm453_vm2, %v1326_v10, %v1421_v0  ;;  %v1438_v23 = vsel %vm453_vm2, %v1382_v52, %v1437_v43  ;;  %v1344_v60 = vadd.f32 %v1343_v14, %v4032_v56  ;;  %v1539_v4 = vld [vmem:[%s4480_s6 + $0x58] sm:$0xff]  ;;  %v1546_v10 = vld [vmem:[%s4480_s6 + $0x90] sm:$0xff]  ;;  %v1549_v11 = vld [vmem:[%s4480_s6 + $0xa8] sm:$0xff]  ;;  %v4198_v0 = vpop.permute.xlu0 %1679  ;;  %v4200_v43 = vpop.permute.xlu1 %1674 }
 0x302   :  { %v1400_v46 = vadd.f32 %v1399_v63, %v1398_v41  ;;  %v1423_v53 = vsel %vm455_vm3, %v1332_v28, %v1422_v54  ;;  %v1439_v6 = vsel %vm455_vm3, %v1388_v50, %v1438_v23  ;;  %v1350_v59 = vadd.f32 %v1349_v5, %v4034_v16  ;;  %v1540_v41 = vld [vmem:[%s4480_s6 + $0x60] sm:$0xff]  ;;  %v1547_v14 = vld [vmem:[%s4480_s6 + $0x98] sm:$0xff]  ;;  %v1550_v42 = vld [vmem:[%s4480_s6 + $0xb0] sm:$0xff] }
 0x303   :  { %v1406_v8 = vadd.f32 %v1405_v15, %v1404_v7  ;;  %v1424_v30 = vsel %vm457_vm4, %v1338_v49, %v1423_v53  ;;  %v1440_v1 = vsel %vm457_vm4, %v1394_v47, %v1439_v6  ;;  %v1356_v24 = vadd.f32 %v1355_v44, %v4036_v27  ;;  %v1528_v27 = vld [vmem:[%s4480_s6] sm:$0xff]  ;;  %v1541_v7 = vld [vmem:[%s4480_s6 + $0x68] sm:$0xff]  ;;  %v1554_v28 = vld [vmem:[%s4480_s6 + $0xd0] sm:$0xff] }
 0x304   :  { %v1412_v2 = vadd.f32 %v1411_v51, %v1410_v57  ;;  %v1425_v34 = vsel %vm459_vm5, %v1344_v60, %v1424_v30  ;;  %v1441_v55 = vsel %vm459_vm5, %v1400_v46, %v1440_v1  ;;  %3128 = vmatprep.mubr.msk.f32.mxu1 %vm1752_vm9, %v1528_v27  ;;  %v1545_v57 = vld [vmem:[%s4480_s6 + $0x88] sm:$0xff]  ;;  %v1552_v52 = vld [vmem:[%s4480_s6 + $0xc0] sm:$0xff]  ;;  %v1555_v5 = vld [vmem:[%s4480_s6 + $0xd8] sm:$0xff] }
 0x305   :  { %v1426_v56 = vsel %vm461_vm6, %v1350_v59, %v1425_v34  ;;  %v1442_v20 = vsel %vm461_vm6, %v1406_v8, %v1441_v55  ;;  %v1553_v63 = vld [vmem:[%s4480_s6 + $0xc8] sm:$0xff]  ;;  %v1556_v44 = vld [vmem:[%s4480_s6 + $0xe0] sm:$0xff]  ;;  %v1558_v50 = vld [vmem:[%s4480_s6 + $0xf0] sm:$0xff]  ;;  %v1600_v54 = vpop.permute.xlu0 %1599  ;;  %v1595_v23 = vpop.permute.xlu1 %1594 }
 0x306   :  { %v1427_v21 = vsel %vm463_vm7, %v1356_v24, %v1426_v56  ;;  %v1443_v16 = vsel %vm463_vm7, %v1412_v2, %v1442_v20  ;;  %v1557_v15 = vld [vmem:[%s4480_s6 + $0xe8] sm:$0xff]  ;;  %v1559_v51 = vld [vmem:[%s4480_s6 + $0xf8] sm:$0xff] }
 0x307   :  { %v3183_v3 = vpack.c.bf16 %v1443_v16, %v1427_v21  ;;  %v3251_v49 = vld [vmem:[%s4482_s8 + $0x4] ss:$8 sps:$4 sm:$0xff]   ;;  %v3254_v47 = vld [vmem:[%s4482_s8 + $0xb4] ss:$8 sps:$4 sm:$0xff]  }
 0x309   :  { %3184 = vmatpush3.bf16.msra.mxu0 %v3183_v3  ;;  %v4208_v60 = vpop.permute.xlu0 %1689  ;;  %v4210_v46 = vpop.permute.xlu1 %1684 }
 0x30c   :  { %3122 = vmatmul.mubr.msk.f32.vlgmr.msra.gmra.mrb[0].mxu0 %vm489_vm8, %v2826_v61 }
 0x30d   :  { %2542 = vmatprep.mubr.bf16.mxu0 %v3251_v49  ;;  %v1610_v53 = vpop.permute.xlu0 %1609  ;;  %v1605_v6 = vpop.permute.xlu1 %1604 }
 0x311   :  { %v4212_v59 = vpop.permute.xlu0 %1699  ;;  %v4214_v8 = vpop.permute.xlu1 %1694 }
 0x315   :  { %v1620_v30 = vpop.permute.xlu0 %1619  ;;  %v1615_v1 = vpop.permute.xlu1 %1614 }
 0x319   :  { %v4216_v24 = vpop.permute.xlu0 %1709  ;;  %v4218_v2 = vpop.permute.xlu1 %1704 }
 0x31d   :  { %v1630_v34 = vpop.permute.xlu0 %1629  ;;  %v1625_v55 = vpop.permute.xlu1 %1624 }
 0x321   :  { %v4220_v56 = vpop.permute.xlu0 %1719  ;;  %v4222_v20 = vpop.permute.xlu1 %1714 }
 0x325   :  { %v1640_v21 = vpop.permute.xlu0 %1639  ;;  %v1635_v16 = vpop.permute.xlu1 %1634 }
 0x329   :  { %v4224_v3 = vpop.permute.xlu0 %1729  ;;  %v4226_v61 = vpop.permute.xlu1 %1724 }
 0x3df   :  { %v1523_v9 = vpop.f32.mrb[0].mxu0 }
 0x3e0   :  { %v1524_v12 = vadd.f32 %v1523_v9, %v1452_v62  ;;  %v3123_v25 = vpop.f32.mrb[1].mxu0 }
 0x3e1   :  { %v1650_v25 = vpop.permute.xlu0 %1649 }
 0x3e2   :  { %v3185_v36 = vpack.c.bf16 %v1527_v17, %v1524_v12 }
 0x3e4   :  { %3187 = vmatprep.subr.msk.bf16.mxu1 %vm3186_vm12, %v3185_v36 }
 0x3e5   :  { %3190 = vmatpush3.bf16.msk.msra.mxu1 %vm3186_vm12, %v3185_v36 }
 0x3e8   :  { %3129 = vmatmul.mubr.msk.f32.vlgmr.msra.gmra.mrb[4].mxu1 %vm1752_vm9, %v1529_v31 }
 0x3e9   :  { %3131 = vmatprep.mubr.msk.f32.mxu1 %vm1752_vm9, %v1530_v26  ;;  %v1645_v26 = vpop.permute.xlu1 %1644 }
 0x3ec   :  { %3132 = vmatmul.mubr.msk.f32.gmra.mrb[6].mxu1 %vm1752_vm9, %v1531_v22 }
 0x3ed   :  { %3134 = vmatprep.mubr.msk.f32.mxu1 %vm1752_vm9, %v1532_v48 }
 0x3f0   :  { %3135 = vmatmul.mubr.msk.f32.gmra.mrb[8].mxu1 %vm1752_vm9, %v1533_v18 }
 0x3f1   :  { %3137 = vmatprep.mubr.msk.f32.mxu1 %vm1752_vm9, %v1534_v32 }
 0x3f4   :  { %3138 = vmatmul.mubr.msk.f32.gmra.mrb[10].mxu1 %vm1752_vm9, %v1535_v35 }
 0x3f5   :  { %3140 = vmatprep.mubr.msk.f32.mxu1 %vm1752_vm9, %v1536_v33 }
 0x3f8   :  { %3141 = vmatmul.mubr.msk.f32.gmra.mrb[12].mxu1 %vm1752_vm9, %v1537_v39 }
 0x3f9   :  { %3143 = vmatprep.mubr.msk.f32.mxu1 %vm1752_vm9, %v1538_v40 }
 0x3fc   :  { %3144 = vmatmul.mubr.msk.f32.gmra.mrb[14].mxu1 %vm1752_vm9, %v1539_v4 }
 0x3fd   :  { %3146 = vmatprep.mubr.msk.f32.mxu1 %vm1752_vm9, %v1540_v41  ;;  %v4230_v41 = vpop.permute.xlu0 %1739 }
 0x400   :  { %3147 = vmatmul.mubr.msk.f32.gmra.mrb[16].mxu1 %vm1752_vm9, %v1541_v7 }
 0x401   :  { %3149 = vmatprep.mubr.msk.f32.mxu1 %vm1752_vm9, %v1542_v19 }
 0x404   :  { %3150 = vmatmul.mubr.msk.f32.gmra.mrb[18].mxu1 %vm1752_vm9, %v1543_v37  ;;  %v4234_v37 = vpop.permute.xlu1 %1734 }
 0x405   :  { %3152 = vmatprep.mubr.msk.f32.mxu1 %vm1752_vm9, %v1544_v38 }
 0x408   :  { %3153 = vmatmul.mubr.msk.f32.gmra.mrb[20].mxu1 %vm1752_vm9, %v1545_v57 }
 0x409   :  { %3155 = vmatprep.mubr.msk.f32.mxu1 %vm1752_vm9, %v1546_v10 }
 0x40c   :  { %3156 = vmatmul.mubr.msk.f32.gmra.mrb[22].mxu1 %vm1752_vm9, %v1547_v14 }
 0x40d   :  { %3158 = vmatprep.mubr.msk.f32.mxu1 %vm1752_vm9, %v1548_v58 }
 0x410   :  { %3159 = vmatmul.mubr.msk.f32.gmra.mrb[24].mxu1 %vm1752_vm9, %v1549_v11 }
 0x411   :  { %3161 = vmatprep.mubr.msk.f32.mxu1 %vm1752_vm9, %v1550_v42 }
 0x414   :  { %3162 = vmatmul.mubr.msk.f32.gmra.mrb[26].mxu1 %vm1752_vm9, %v1551_v45 }
 0x415   :  { %3164 = vmatprep.mubr.msk.f32.mxu1 %vm1752_vm9, %v1552_v52  ;;  %v1660_v52 = vpop.permute.xlu0 %1659 }
 0x418   :  { %3165 = vmatmul.mubr.msk.f32.gmra.mrb[28].mxu1 %vm1752_vm9, %v1553_v63 }
 0x419   :  { %3167 = vmatprep.mubr.msk.f32.mxu1 %vm1752_vm9, %v1554_v28 }
 0x41c   :  { %3168 = vmatmul.mubr.msk.f32.gmra.mrb[30].mxu1 %vm1752_vm9, %v1555_v5  ;;  %v1655_v5 = vpop.permute.xlu1 %1654 }
 0x41d   :  { %3170 = vmatprep.mubr.msk.f32.mxu1 %vm1752_vm9, %v1556_v44 }
 0x420   :  { %3171 = vmatmul.mubr.msk.f32.gmra.mrb[32].mxu1 %vm1752_vm9, %v1557_v15 }
 0x421   :  { %3173 = vmatprep.mubr.msk.f32.mxu1 %vm1752_vm9, %v1558_v50 }
 0x424   :  { %3174 = vmatmul.mubr.msk.f32.gmra.mrb[34].mxu1 %vm1752_vm9, %v1559_v51 }
 0x425   :  { %2630 = vmatprep.mubr.bf16.mxu1 %v3254_v47 }
 0x4bb   :  { %v3130_v27 = vpop.f32.mrb[4].mxu1 }
 0x4bc   :  { %v1925_v62 = vadd.f32 %v3130_v27, %v1600_v54  ;;  %v1919_v9 = vpop.f32.mrb[5].mxu1 }
 0x4bd   :  { %v1920_v17 = vadd.f32 %v1919_v9, %v1595_v23 }
 0x4be   :  { %v2079_v12 = vmax.f32 %v1925_v62, 0.0 }
 0x4bf   :  { %v2078_v36 = vmax.f32 %v1920_v17, 0.0  ;;  %v3133_v31 = vpop.f32.mrb[6].mxu1 }
 0x4c0   :  { %v1935_v22 = vadd.f32 %v3133_v31, %v1610_v53  ;;  %v1929_v48 = vpop.f32.mrb[7].mxu1 }
 0x4c1   :  { %v4228_v18 = vpack.c.bf16 %v2079_v12, %v2078_v36  ;;  %v1930_v32 = vadd.f32 %v1929_v48, %v1605_v6  ;;  %v4240_v6 = vpop.permute.xlu0 %1749 }
 0x4c2   :  { %v2081_v35 = vmax.f32 %v1935_v22, 0.0 }
 0x4c3   :  { %v2080_v33 = vmax.f32 %v1930_v32, 0.0  ;;  %v3136_v39 = vpop.f32.mrb[8].mxu1 }
 0x4c4   :  { %v1945_v40 = vadd.f32 %v3136_v39, %v1620_v30  ;;  %v1939_v4 = vpop.f32.mrb[9].mxu1 }
 0x4c5   :  { %v4232_v7 = vpack.c.bf16 %v2081_v35, %v2080_v33  ;;  %v1940_v19 = vadd.f32 %v1939_v4, %v1615_v1  ;;  %v1670_v36 = vpop.permute.xlu0 %1669 }
 0x4c6   :  { %v2083_v38 = vmax.f32 %v1945_v40, 0.0 }
 0x4c7   :  { %v2082_v57 = vmax.f32 %v1940_v19, 0.0  ;;  %v3139_v10 = vpop.f32.mrb[10].mxu1 }
 0x4c8   :  { %v1955_v14 = vadd.f32 %v3139_v10, %v1630_v34  ;;  %v1949_v58 = vpop.f32.mrb[11].mxu1  ;;  %v4244_v34 = vpop.permute.xlu1 %1744 }
 0x4c9   :  { %v4236_v11 = vpack.c.bf16 %v2083_v38, %v2082_v57  ;;  %v1950_v42 = vadd.f32 %v1949_v58, %v1625_v55 }
 0x4ca   :  { %v2085_v45 = vmax.f32 %v1955_v14, 0.0 }
 0x4cb   :  { %v2084_v63 = vmax.f32 %v1950_v42, 0.0  ;;  %v3142_v28 = vpop.f32.mrb[12].mxu1 }
 0x4cc   :  { %v1965_v44 = vadd.f32 %v3142_v28, %v1640_v21  ;;  %v1959_v15 = vpop.f32.mrb[13].mxu1  ;;  %v1665_v22 = vpop.permute.xlu1 %1664 }
 0x4cd   :  { %v4238_v50 = vpack.c.bf16 %v2085_v45, %v2084_v63  ;;  %v1960_v51 = vadd.f32 %v1959_v15, %v1635_v16 }
 0x4ce   :  { %v2087_v49 = vmax.f32 %v1965_v44, 0.0 }
 0x4cf   :  { %v2086_v47 = vmax.f32 %v1960_v51, 0.0  ;;  %v3145_v54 = vpop.f32.mrb[14].mxu1 }
 0x4d0   :  { %v1975_v23 = vadd.f32 %v3145_v54, %v1650_v25  ;;  %v1969_v53 = vpop.f32.mrb[15].mxu1 }
 0x4d1   :  { %v4242_v30 = vpack.c.bf16 %v2087_v49, %v2086_v47  ;;  %v1970_v1 = vadd.f32 %v1969_v53, %v1645_v26 }
 0x4d2   :  { %v2089_v55 = vmax.f32 %v1975_v23, 0.0 }
 0x4d3   :  { %v2088_v27 = vmax.f32 %v1970_v1, 0.0  ;;  %v3148_v62 = vpop.f32.mrb[16].mxu1 }
 0x4d4   :  { %v1985_v21 = vadd.f32 %v3148_v62, %v1660_v52  ;;  %v1979_v9 = vpop.f32.mrb[17].mxu1 }
 0x4d5   :  { %v4246_v17 = vpack.c.bf16 %v2089_v55, %v2088_v27  ;;  %v1980_v16 = vadd.f32 %v1979_v9, %v1655_v5 }
 0x4d6   :  { %v2091_v12 = vmax.f32 %v1985_v21, 0.0 }
 0x4d7   :  { %v2090_v31 = vmax.f32 %v1980_v16, 0.0  ;;  %v3151_v25 = vpop.f32.mrb[18].mxu1 }
 0x4d8   :  { %v1995_v48 = vadd.f32 %v3151_v25, %v1670_v36  ;;  %v1989_v32 = vpop.f32.mrb[19].mxu1 }
 0x4d9   :  { %v4248_v35 = vpack.c.bf16 %v2091_v12, %v2090_v31  ;;  %v1990_v26 = vadd.f32 %v1989_v32, %v1665_v22 }
 0x4da   :  { %v2093_v33 = vmax.f32 %v1995_v48, 0.0 }
 0x4db   :  { %v2092_v39 = vmax.f32 %v1990_v26, 0.0  ;;  %v3154_v40 = vpop.f32.mrb[20].mxu1 }
 0x4dc   :  { %v2005_v4 = vadd.f32 %v3154_v40, %v4198_v0  ;;  %v1999_v19 = vpop.f32.mrb[21].mxu1  ;;  %v3260_v40 = vld [vmem:[%s4482_s8 + $0xc0] ss:$8 sps:$4 sm:$0xff]  }
 0x4dd   :  { %v4251_v38 = vpack.c.bf16 %v2093_v33, %v2092_v39  ;;  %v2000_v57 = vadd.f32 %v1999_v19, %v4200_v43  ;;  %v3259_v39 = vld [vmem:[%s4482_s8 + $0x10] ss:$8 sps:$4 sm:$0xff]   ;;  %v3263_v19 = vld [vmem:[%s4482_s8 + $0xd4] ss:$8 sps:$4 sm:$0xff]  }
 0x4de   :  { %v2095_v10 = vmax.f32 %v2005_v4, 0.0  ;;  %v3261_v4 = vld [vmem:[%s4482_s8 + $0x24] ss:$8 sps:$4 sm:$0xff]  }
 0x4df   :  { %v2094_v14 = vmax.f32 %v2000_v57, 0.0  ;;  %v3157_v58 = vpop.f32.mrb[22].mxu1  ;;  %v3266_v57 = vld [vmem:[%s4482_s8 + $0xd0] ss:$8 sps:$4 sm:$0xff]  }
 0x4e0   :  { %v2015_v42 = vadd.f32 %v3157_v58, %v4208_v60  ;;  %v2009_v45 = vpop.f32.mrb[23].mxu1  ;;  %v3271_v58 = vld [vmem:[%s4482_s8 + $0x30] ss:$8 sps:$4 sm:$0xff]  }
 0x4e1   :  { %v2118_v52 = vpack.c.bf16 %v2095_v10, %v2094_v14  ;;  %v2010_v63 = vadd.f32 %v2009_v45, %v4210_v46  ;;  %v3267_v10 = vld [vmem:[%s4482_s8 + $0x34] ss:$8 sps:$4 sm:$0xff]   ;;  %v3269_v14 = vld [vmem:[%s4482_s8 + $0xe4] ss:$8 sps:$4 sm:$0xff]  }
 0x4e2   :  { %v2097_v28 = vmax.f32 %v2015_v42, 0.0  ;;  %v3272_v42 = vld [vmem:[%s4482_s8 + $0xe0] ss:$8 sps:$4 sm:$0xff]   ;;  %v3273_v45 = vld [vmem:[%s4482_s8 + $0x44] ss:$8 sps:$4 sm:$0xff]  }
 0x4e3   :  { %v2096_v5 = vmax.f32 %v2010_v63, 0.0  ;;  %v3160_v44 = vpop.f32.mrb[24].mxu1  ;;  %2956 = vmatprep.subr.bf16.mxu0 %v2118_v52  ;;  %3223 = vmatprep.subr.bf16.mxu1 %v2118_v52  ;;  %v3275_v52 = vld [vmem:[%s4482_s8 + $0xf4] ss:$8 sps:$4 sm:$0xff]   ;;  %v3277_v63 = vld [vmem:[%s4482_s8 + $0x40] ss:$8 sps:$4 sm:$0xff]  }
 0x4e4   :  { %v2025_v0 = vadd.f32 %v3160_v44, %v4212_v59  ;;  %v2019_v15 = vpop.f32.mrb[25].mxu1  ;;  %2957 = vmatpush3.bf16.msra.mxu0 %v4228_v18  ;;  %3231 = vmatpush3.bf16.msra.mxu1 %v4228_v18  ;;  %v3281_v44 = vld [vmem:[%s4482_s8 + $0x50] ss:$8 sps:$4 sm:$0xff]  }
 0x4e5   :  { %v2119_v43 = vpack.c.bf16 %v2097_v28, %v2096_v5  ;;  %v2020_v51 = vadd.f32 %v2019_v15, %v4214_v8  ;;  %v3278_v28 = vld [vmem:[%s4482_s8 + $0xf0] ss:$8 sps:$4 sm:$0xff]   ;;  %v3279_v5 = vld [vmem:[%s4482_s8 + $0x54] ss:$8 sps:$4 sm:$0xff]   ;;  %v3284_v15 = vld [vmem:[%s4482_s8 + $0x60] ss:$8 sps:$4 sm:$0xff]  }
 0x4e6   :  { %v2099_v60 = vmax.f32 %v2025_v0, 0.0  ;;  %v3282_v0 = vld [vmem:[%s4482_s8 + $0x64] ss:$8 sps:$4 sm:$0xff]  }
 0x4e7   :  { %v2098_v49 = vmax.f32 %v2020_v51, 0.0  ;;  %v3163_v47 = vpop.f32.mrb[26].mxu1  ;;  %2958 = vmatprep.subr.bf16.mxu0 %v2119_v43  ;;  %3224 = vmatprep.subr.bf16.mxu1 %v2119_v43  ;;  %v3285_v43 = vld [vmem:[%s4482_s8 + $0x74] ss:$8 sps:$4 sm:$0xff]   ;;  %v3287_v51 = vld [vmem:[%s4482_s8 + $0x70] ss:$8 sps:$4 sm:$0xff]  }
 0x4e8   :  { %v2035_v46 = vadd.f32 %v3163_v47, %v4216_v24  ;;  %v2029_v54 = vpop.f32.mrb[27].mxu1  ;;  %2959 = vmatpush3.bf16.msra.mxu0 %v4232_v7  ;;  %3232 = vmatpush3.bf16.msra.mxu1 %v4232_v7  ;;  %v3291_v47 = vld [vmem:[%s4482_s8 + $0x94] ss:$8 sps:$4 sm:$0xff]  }
 0x4e9   :  { %v2120_v59 = vpack.c.bf16 %v2099_v60, %v2098_v49  ;;  %v2030_v23 = vadd.f32 %v2029_v54, %v4218_v2  ;;  %v3288_v60 = vld [vmem:[%s4482_s8 + $0x84] ss:$8 sps:$4 sm:$0xff]   ;;  %v3290_v49 = vld [vmem:[%s4482_s8 + $0x80] ss:$8 sps:$4 sm:$0xff]  }
 0x4ea   :  { %v2101_v53 = vmax.f32 %v2035_v46, 0.0  ;;  %v3293_v46 = vld [vmem:[%s4482_s8 + $0x90] ss:$8 sps:$4 sm:$0xff]   ;;  %v3294_v54 = vld [vmem:[%s4482_s8 + $0xa4] ss:$8 sps:$4 sm:$0xff]  }
 0x4eb   :  { %v2100_v18 = vmax.f32 %v2030_v23, 0.0  ;;  %v3166_v1 = vpop.f32.mrb[28].mxu1  ;;  %2960 = vmatprep.subr.bf16.mxu0 %v2120_v59  ;;  %3225 = vmatprep.subr.bf16.mxu1 %v2120_v59  ;;  %v3296_v59 = vld [vmem:[%s4482_s8 + $0xa0] ss:$8 sps:$4 sm:$0xff]   ;;  %v4374_v23 = vpop.permute.xlu1 %2272 }
 0x4ec   :  { %v2045_v8 = vadd.f32 %v3166_v1, %v4220_v56  ;;  %v2039_v55 = vpop.f32.mrb[29].mxu1  ;;  %2961 = vmatpush3.bf16.msra.mxu0 %v4236_v11  ;;  %3233 = vmatpush3.bf16.msra.mxu1 %v4236_v11 }
 0x4ed   :  { %v2121_v24 = vpack.c.bf16 %v2101_v53, %v2100_v18  ;;  %v2040_v27 = vadd.f32 %v2039_v55, %v4222_v20  ;;  %v4376_v53 = vpop.permute.xlu0 %2277 }
 0x4ee   :  { %v2103_v62 = vmax.f32 %v2045_v8, 0.0 }
 0x4ef   :  { %v2102_v7 = vmax.f32 %v2040_v27, 0.0  ;;  %v3169_v21 = vpop.f32.mrb[30].mxu1  ;;  %2962 = vmatprep.subr.bf16.mxu0 %v2121_v24  ;;  %3226 = vmatprep.subr.bf16.mxu1 %v2121_v24  ;;  %v2193_v18 = vpop.permute.xlu1 %2192 }
 0x4f0   :  { %v2055_v2 = vadd.f32 %v3169_v21, %v4224_v3  ;;  %v2049_v9 = vpop.f32.mrb[31].mxu1  ;;  %2963 = vmatpush3.bf16.msra.mxu0 %v4238_v50  ;;  %3234 = vmatpush3.bf16.msra.mxu1 %v4238_v50 }
 0x4f1   :  { %v2122_v56 = vpack.c.bf16 %v2103_v62, %v2102_v7  ;;  %v2050_v16 = vadd.f32 %v2049_v9, %v4226_v61  ;;  %v2198_v1 = vpop.permute.xlu0 %2197 }
 0x4f2   :  { %v2105_v12 = vmax.f32 %v2055_v2, 0.0 }
 0x4f3   :  { %v2104_v11 = vmax.f32 %v2050_v16, 0.0  ;;  %v3172_v36 = vpop.f32.mrb[32].mxu1  ;;  %2964 = vmatprep.subr.bf16.mxu0 %v2122_v56  ;;  %3227 = vmatprep.subr.bf16.mxu1 %v2122_v56  ;;  %v4378_v8 = vpop.permute.xlu1 %2282 }
 0x4f4   :  { %v2065_v20 = vadd.f32 %v3172_v36, %v4230_v41  ;;  %v2059_v31 = vpop.f32.mrb[33].mxu1  ;;  %2965 = vmatpush3.bf16.msra.mxu0 %v4242_v30  ;;  %3235 = vmatpush3.bf16.msra.mxu1 %v4242_v30 }
 0x4f5   :  { %v2123_v3 = vpack.c.bf16 %v2105_v12, %v2104_v11  ;;  %v2060_v25 = vadd.f32 %v2059_v31, %v4234_v37  ;;  %v4380_v55 = vpop.permute.xlu0 %2287  ;;  %v4395_v12 = vld [vmem:[%s4484_s10] sm:$0x3]  ;;  %v2721_v11 = vsub.s32 1, %v3485_v13  ;;  %s3396_s10 = smov [#allocation6]  }
 0x4f6   :  { %v2107_v22 = vmax.f32 %v2065_v20, 0.0  ;;  %s2802_s25 = sshll.u32 %s3396_s10, 4  ;;  %s2803_s25 = int_to_ptr.vmem [resolvable:$true] %s2802_s25 }
 0x4f7   :  { %v2106_v50 = vmax.f32 %v2060_v25, 0.0  ;;  %v3175_v48 = vpop.f32.mrb[34].mxu1  ;;  %2966 = vmatprep.subr.bf16.mxu0 %v2123_v3  ;;  %3228 = vmatprep.subr.bf16.mxu1 %v2123_v3  ;;  %v2203_v24 = vpop.permute.xlu1 %2202  ;;  %v2722_v31 = vrot.slane %v4395_v12, %v2721_v11  ;;  %s3363_s26 = scalar_lea.vmem %s2803_s25, 16  ;;  %s3367_s27 = scalar_lea.vmem %s2803_s25, 32 }
 0x4f8   :  { %v2075_v61 = vadd.f32 %v3175_v48, %v4240_v6  ;;  %v2069_v32 = vpop.f32.mrb[35].mxu1  ;;  %2967 = vmatpush3.bf16.msra.mxu0 %v4246_v17  ;;  %3236 = vmatpush3.bf16.msra.mxu1 %v4246_v17  ;;  %v3249_v6 = vld [vmem:[%s4482_s8] ss:$8 sps:$4 sm:$0xff]   ;;  %v3252_v17 = vld [vmem:[%s4482_s8 + $0xb0] ss:$8 sps:$4 sm:$0xff]   ;;  %p3364_p5 = scmp.ne.s32.totalorder %s2803_s25, %s3363_s26  ;;  %p3368_p6 = scmp.lt.s32.totalorder %s2803_s25, %s2803_s25 }
 0x4f9   :  { %v2124_v41 = vpack.c.bf16 %v2107_v22, %v2106_v50  ;;  %v2070_v26 = vadd.f32 %v2069_v32, %v4244_v34  ;;  %v3255_v34 = vld [vmem:[%s4482_s8 + $0x14] ss:$8 sps:$4 sm:$0xff]   ;;  %v2208_v27 = vpop.permute.xlu0 %2207  ;;  %p3369_p7 = scmp.lt.s32.totalorder %s3367_s27, %s3363_s26 }
 0x4fa   :  { %v2109_v33 = vmax.f32 %v2075_v61, 0.0 }
 0x4fb   :  { %v2108_v30 = vmax.f32 %v2070_v26, 0.0  ;;  %2968 = vmatprep.subr.bf16.mxu0 %v2124_v41  ;;  %3229 = vmatprep.subr.bf16.mxu1 %v2124_v41  ;;  %v4382_v62 = vpop.permute.xlu1 %2292  ;;  %p3370_p8 = por %p3369_p7, %p3368_p6 }
 0x4fc   :  { %2969 = vmatpush3.bf16.msra.mxu0 %v4248_v35  ;;  %3237 = vmatpush3.bf16.msra.mxu1 %v4248_v35  ;;  %v3257_v35 = vld [vmem:[%s4482_s8 + $0xc4] ss:$8 sps:$4 sm:$0xff]  }
 0x4fd   :  { %v2125_v37 = vpack.c.bf16 %v2109_v33, %v2108_v30  ;;  %v4384_v7 = vpop.permute.xlu0 %2297  ;;  %p3371_p9 = pnand %p3370_p8, %p3364_p5 }
 0x4ff   :  { %2970 = vmatprep.subr.bf16.mxu0 %v2125_v37  ;;  %3230 = vmatprep.subr.bf16.mxu1 %v2125_v37  ;;  %v4386_v21 = vpop.permute.xlu1 %2212 }
 0x500   :  { %2971 = vmatpush3.bf16.msra.mxu0 %v4251_v38  ;;  %3238 = vmatpush3.bf16.msra.mxu1 %v4251_v38  ;;  %v3265_v38 = vld [vmem:[%s4482_s8 + $0x20] ss:$8 sps:$4 sm:$0xff]  }
 0x501   :  { %v4388_v2 = vpop.permute.xlu0 %2217 }
 0x503   :  { %2543 = vmatmul.mubr.bf16.vlgmr.msra.gmra.mrb[4].mxu0 %v3249_v6  ;;  %2631 = vmatmul.mubr.bf16.vlgmr.msra.gmra.mrb[36].mxu1 %v3252_v17  ;;  %v2303_v9 = vpop.permute.xlu1 %2302 }
 0x504   :  { %2550 = vmatprep.mubr.bf16.mxu0 %v3255_v34  ;;  %2638 = vmatprep.mubr.bf16.mxu1 %v3257_v35 }
 0x505   :  { %v2308_v56 = vpop.permute.xlu0 %2307 }
 0x507   :  { %v4390_v16 = vpop.permute.xlu1 %2222 }
 0x509   :  { %v4398_v36 = vpop.permute.xlu0 %2227 }
 0x50b   :  { %2551 = vmatmul.mubr.bf16.gmra.mrb[8].mxu0 %v3259_v39  ;;  %2639 = vmatmul.mubr.bf16.gmra.mrb[40].mxu1 %v3260_v40  ;;  %v2313_v20 = vpop.permute.xlu1 %2312 }
 0x50c   :  { %2558 = vmatprep.mubr.bf16.mxu0 %v3261_v4  ;;  %2646 = vmatprep.mubr.bf16.mxu1 %v3263_v19 }
 0x50d   :  { %v2318_v3 = vpop.permute.xlu0 %2317 }
 0x50f   :  { %v4401_v25 = vpop.permute.xlu1 %2232 }
 0x511   :  { %v4403_v22 = vpop.permute.xlu0 %2237 }
 0x513   :  { %2559 = vmatmul.mubr.bf16.gmra.mrb[12].mxu0 %v3265_v38  ;;  %2647 = vmatmul.mubr.bf16.gmra.mrb[44].mxu1 %v3266_v57  ;;  %v2323_v50 = vpop.permute.xlu1 %2322 }
 0x514   :  { %2566 = vmatprep.mubr.bf16.mxu0 %v3267_v10  ;;  %2654 = vmatprep.mubr.bf16.mxu1 %v3269_v14 }
 0x515   :  { %v2328_v19 = vpop.permute.xlu0 %2327 }
 0x517   :  { %v4405_v38 = vpop.permute.xlu1 %2242 }
 0x51b   :  { %2567 = vmatmul.mubr.bf16.gmra.mrb[16].mxu0 %v3271_v58  ;;  %2655 = vmatmul.mubr.bf16.gmra.mrb[48].mxu1 %v3272_v42 }
 0x51c   :  { %2574 = vmatprep.mubr.bf16.mxu0 %v3273_v45  ;;  %2662 = vmatprep.mubr.bf16.mxu1 %v3275_v52 }
 0x523   :  { %2575 = vmatmul.mubr.bf16.gmra.mrb[20].mxu0 %v3277_v63  ;;  %2663 = vmatmul.mubr.bf16.gmra.mrb[52].mxu1 %v3278_v28 }
 0x524   :  { %2582 = vmatprep.mubr.bf16.mxu0 %v3279_v5  ;;  %2789 = vmatprep.mubr.f32.mxu1 %v2722_v31 }
 0x52b   :  { %2583 = vmatmul.mubr.bf16.gmra.mrb[24].mxu0 %v3281_v44 }
 0x52c   :  { %2590 = vmatprep.mubr.bf16.mxu0 %v3282_v0 }
 0x533   :  { %2591 = vmatmul.mubr.bf16.gmra.mrb[28].mxu0 %v3284_v15 }
 0x534   :  { %2598 = vmatprep.mubr.bf16.mxu0 %v3285_v43 }
 0x53b   :  { %2599 = vmatmul.mubr.bf16.gmra.mrb[32].mxu0 %v3287_v51 }
 0x53c   :  { %2606 = vmatprep.mubr.bf16.mxu0 %v3288_v60 }
 0x543   :  { %2607 = vmatmul.mubr.bf16.gmra.mrb[36].mxu0 %v3290_v49 }
 0x544   :  { %2614 = vmatprep.mubr.bf16.mxu0 %v3291_v47 }
 0x54b   :  { %2615 = vmatmul.mubr.bf16.gmra.mrb[40].mxu0 %v3293_v46 }
 0x54c   :  { %2622 = vmatprep.mubr.bf16.mxu0 %v3294_v54 }
 0x553   :  { %2623 = vmatmul.mubr.bf16.gmra.mrb[44].mxu0 %v3296_v59 }
 0x5d6   :  { %v2972_v48 = vpop.f32.mrb[4].mxu0  ;;  %v3038_v61 = vpop.f32.mrb[36].mxu1 }
 0x5d7   :  { %v2973_v32 = vpop.f32.mrb[5].mxu0  ;;  %v3039_v41 = vpop.f32.mrb[37].mxu1 }
 0x5d8   :  { %v2974_v26 = vadd.f32 %v2973_v32, %v2972_v48  ;;  %v3040_v33 = vadd.f32 %v3039_v41, %v3038_v61  ;;  %v2975_v30 = vpop.f32.mrb[6].mxu0  ;;  %v3041_v13 = vpop.f32.mrb[38].mxu1 }
 0x5d9   :  { %v2976_v37 = vpop.f32.mrb[7].mxu0  ;;  %v3042_v6 = vpop.f32.mrb[39].mxu1 }
 0x5da   :  { %v2545_v17 = vadd.f32 %v2974_v26, %v2193_v18  ;;  %v2633_v34 = vadd.f32 %v3040_v33, %v2303_v9  ;;  %v2977_v35 = vadd.f32 %v2976_v37, %v2975_v30  ;;  %v3043_v39 = vadd.f32 %v3042_v6, %v3041_v13  ;;  %v2333_v9 = vpop.permute.xlu1 %2332 }
 0x5dc   :  { %v2548_v40 = vadd.f32 %v2977_v35, %v2198_v1  ;;  %v2636_v4 = vadd.f32 %v3043_v39, %v2308_v56  ;;  %v2671_v57 = vmax.f32 %v2545_v17, 0.0  ;;  %v2693_v10 = vmax.f32 %v2633_v34, 0.0  ;;  %v4411_v1 = vpop.permute.xlu0 %2247 }
 0x5de   :  { %v2672_v14 = vmax.f32 %v2548_v40, 0.0  ;;  %v2694_v58 = vmax.f32 %v2636_v4, 0.0  ;;  %v2978_v42 = vpop.f32.mrb[8].mxu0  ;;  %v3044_v45 = vpop.f32.mrb[40].mxu1 }
 0x5df   :  { %v2979_v52 = vpop.f32.mrb[9].mxu0  ;;  %v3045_v63 = vpop.f32.mrb[41].mxu1 }
 0x5e0   :  { %v4407_v28 = vpack.c.bf16 %v2672_v14, %v2671_v57  ;;  %v2980_v5 = vadd.f32 %v2979_v52, %v2978_v42  ;;  %v3046_v44 = vadd.f32 %v3045_v63, %v3044_v45  ;;  %v2981_v0 = vpop.f32.mrb[10].mxu0  ;;  %v3047_v15 = vpop.f32.mrb[42].mxu1  ;;  %v4409_v43 = vpack.c.bf16 %v2694_v58, %v2693_v10 }
 0x5e1   :  { %v2982_v51 = vpop.f32.mrb[11].mxu0  ;;  %v3048_v60 = vpop.f32.mrb[43].mxu1 }
 0x5e2   :  { %v2553_v49 = vadd.f32 %v2980_v5, %v2203_v24  ;;  %v2641_v47 = vadd.f32 %v3046_v44, %v2313_v20  ;;  %v2983_v46 = vadd.f32 %v2982_v51, %v2981_v0  ;;  %v3049_v54 = vadd.f32 %v3048_v60, %v3047_v15  ;;  %v2338_v4 = vpop.permute.xlu0 %2337  ;;  %v4419_v57 = vpop.permute.xlu1 %2252 }
 0x5e4   :  { %v2556_v59 = vadd.f32 %v2983_v46, %v2208_v27  ;;  %v2644_v18 = vadd.f32 %v3049_v54, %v2318_v3  ;;  %v2673_v56 = vmax.f32 %v2553_v49, 0.0  ;;  %v2695_v11 = vmax.f32 %v2641_v47, 0.0 }
 0x5e6   :  { %v2674_v31 = vmax.f32 %v2556_v59, 0.0  ;;  %v2696_v48 = vmax.f32 %v2644_v18, 0.0  ;;  %v2984_v61 = vpop.f32.mrb[12].mxu0  ;;  %v3050_v32 = vpop.f32.mrb[44].mxu1 }
 0x5e7   :  { %v2985_v41 = vpop.f32.mrb[13].mxu0  ;;  %v3051_v26 = vpop.f32.mrb[45].mxu1 }
 0x5e8   :  { %v4413_v33 = vpack.c.bf16 %v2674_v31, %v2673_v56  ;;  %v2986_v30 = vadd.f32 %v2985_v41, %v2984_v61  ;;  %v3052_v24 = vadd.f32 %v3051_v26, %v3050_v32  ;;  %v2987_v20 = vpop.f32.mrb[14].mxu0  ;;  %v3053_v13 = vpop.f32.mrb[46].mxu1  ;;  %v4415_v37 = vpack.c.bf16 %v2696_v48, %v2695_v11 }
 0x5e9   :  { %v2988_v27 = vpop.f32.mrb[15].mxu0  ;;  %v3054_v3 = vpop.f32.mrb[47].mxu1 }
 0x5ea   :  { %v2561_v6 = vadd.f32 %v2986_v30, %v4386_v21  ;;  %v2649_v17 = vadd.f32 %v3052_v24, %v2323_v50  ;;  %v2989_v34 = vadd.f32 %v2988_v27, %v2987_v20  ;;  %v3055_v35 = vadd.f32 %v3054_v3, %v3053_v13  ;;  %v2258_v18 = vpop.permute.xlu0 %2257  ;;  %v2343_v56 = vpop.permute.xlu1 %2342 }
 0x5ec   :  { %v2564_v39 = vadd.f32 %v2989_v34, %v4388_v2  ;;  %v2652_v40 = vadd.f32 %v3055_v35, %v2328_v19  ;;  %v2675_v10 = vmax.f32 %v2561_v6, 0.0  ;;  %v2697_v14 = vmax.f32 %v2649_v17, 0.0 }
 0x5ee   :  { %v2676_v58 = vmax.f32 %v2564_v39, 0.0  ;;  %v2698_v42 = vmax.f32 %v2652_v40, 0.0  ;;  %v2990_v45 = vpop.f32.mrb[16].mxu0  ;;  %v3056_v52 = vpop.f32.mrb[48].mxu1 }
 0x5ef   :  { %v2991_v63 = vpop.f32.mrb[17].mxu0  ;;  %v3057_v5 = vpop.f32.mrb[49].mxu1 }
 0x5f0   :  { %v4421_v44 = vpack.c.bf16 %v2676_v58, %v2675_v10  ;;  %v2992_v21 = vadd.f32 %v2991_v63, %v2990_v45  ;;  %v3058_v50 = vadd.f32 %v3057_v5, %v3056_v52  ;;  %v2993_v0 = vpop.f32.mrb[18].mxu0  ;;  %v3059_v15 = vpop.f32.mrb[50].mxu1  ;;  %v4423_v51 = vpack.c.bf16 %v2698_v42, %v2697_v14 }
 0x5f1   :  { %v2994_v2 = vpop.f32.mrb[19].mxu0  ;;  %v3060_v19 = vpop.f32.mrb[51].mxu1 }
 0x5f2   :  { %v2569_v60 = vadd.f32 %v2992_v21, %v4390_v16  ;;  %v2657_v49 = vadd.f32 %v3058_v50, %v2333_v9  ;;  %v2995_v47 = vadd.f32 %v2994_v2, %v2993_v0  ;;  %v3061_v46 = vadd.f32 %v3060_v19, %v3059_v15  ;;  %v2348_v39 = vpop.permute.xlu0 %2347 }
 0x5f4   :  { %v2572_v54 = vadd.f32 %v2995_v47, %v4398_v36  ;;  %v2660_v59 = vadd.f32 %v3061_v46, %v2338_v4  ;;  %v2677_v11 = vmax.f32 %v2569_v60, 0.0  ;;  %v2699_v31 = vmax.f32 %v2657_v49, 0.0 }
 0x5f6   :  { %v2678_v48 = vmax.f32 %v2572_v54, 0.0  ;;  %v2700_v61 = vmax.f32 %v2660_v59, 0.0  ;;  %v2996_v32 = vpop.f32.mrb[20].mxu0  ;;  %v3062_v41 = vpop.f32.mrb[52].mxu1 }
 0x5f7   :  { %v2997_v26 = vpop.f32.mrb[21].mxu0  ;;  %v3063_v30 = vpop.f32.mrb[53].mxu1 }
 0x5f8   :  { %v4427_v24 = vpack.c.bf16 %v2678_v48, %v2677_v11  ;;  %v2998_v20 = vadd.f32 %v2997_v26, %v2996_v32  ;;  %v3064_v16 = vadd.f32 %v3063_v30, %v3062_v41  ;;  %v2999_v9 = vpop.f32.mrb[22].mxu0  ;;  %v3065_v13 = vpop.f32.mrb[54].mxu1  ;;  %v4429_v27 = vpack.c.bf16 %v2700_v61, %v2699_v31 }
 0x5f9   :  { %v3000_v36 = vpop.f32.mrb[23].mxu0  ;;  %v3066_v3 = vpop.f32.mrb[55].mxu1 }
 0x5fa   :  { %v2577_v6 = vadd.f32 %v2998_v20, %v4401_v25  ;;  %v2665_v17 = vadd.f32 %v3064_v16, %v2343_v56  ;;  %v3001_v34 = vadd.f32 %v3000_v36, %v2999_v9  ;;  %v3067_v35 = vadd.f32 %v3066_v3, %v3065_v13  ;;  %v2263_v30 = vpop.permute.xlu1 %2262  ;;  %v2268_v13 = vpop.permute.xlu0 %2267 }
 0x5fc   :  { %v2580_v40 = vadd.f32 %v3001_v34, %v4403_v22  ;;  %v2668_v4 = vadd.f32 %v3067_v35, %v2348_v39  ;;  %v2679_v10 = vmax.f32 %v2577_v6, 0.0  ;;  %v2701_v14 = vmax.f32 %v2665_v17, 0.0 }
 0x5fe   :  { %v2680_v58 = vmax.f32 %v2580_v40, 0.0  ;;  %v2702_v42 = vmax.f32 %v2668_v4, 0.0  ;;  %v3002_v45 = vpop.f32.mrb[24].mxu0 }
 0x5ff   :  { %v3003_v52 = vpop.f32.mrb[25].mxu0 }
 0x600   :  { %v4433_v63 = vpack.c.bf16 %v2680_v58, %v2679_v10  ;;  %v3004_v5 = vadd.f32 %v3003_v52, %v3002_v45  ;;  %v3005_v21 = vpop.f32.mrb[26].mxu0  ;;  %v4435_v50 = vpack.c.bf16 %v2702_v42, %v2701_v14 }
 0x601   :  { %v3006_v25 = vpop.f32.mrb[27].mxu0 }
 0x602   :  { %v2585_v0 = vadd.f32 %v3004_v5, %v4405_v38  ;;  %v3007_v15 = vadd.f32 %v3006_v25, %v3005_v21 }
 0x604   :  { %v2588_v2 = vadd.f32 %v3007_v15, %v4411_v1  ;;  %v2681_v22 = vmax.f32 %v2585_v0, 0.0 }
 0x606   :  { %v2682_v19 = vmax.f32 %v2588_v2, 0.0  ;;  %v3008_v60 = vpop.f32.mrb[28].mxu0 }
 0x607   :  { %v3009_v49 = vpop.f32.mrb[29].mxu0 }
 0x608   :  { %v4439_v47 = vpack.c.bf16 %v2682_v19, %v2681_v22  ;;  %v3010_v46 = vadd.f32 %v3009_v49, %v3008_v60  ;;  %v3011_v54 = vpop.f32.mrb[30].mxu0 }
 0x609   :  { %v3012_v59 = vpop.f32.mrb[31].mxu0 }
 0x60a   :  { %v2593_v56 = vadd.f32 %v3010_v46, %v4419_v57  ;;  %v3013_v11 = vadd.f32 %v3012_v59, %v3011_v54 }
 0x60c   :  { %v2596_v31 = vadd.f32 %v3013_v11, %v2258_v18  ;;  %v2683_v48 = vmax.f32 %v2593_v56, 0.0 }
 0x60e   :  { %v2684_v61 = vmax.f32 %v2596_v31, 0.0  ;;  %v3014_v32 = vpop.f32.mrb[32].mxu0 }
 0x60f   :  { %v3015_v38 = vpop.f32.mrb[33].mxu0 }
 0x610   :  { %v3217_v41 = vpack.c.bf16 %v2684_v61, %v2683_v48  ;;  %v3016_v26 = vadd.f32 %v3015_v38, %v3014_v32  ;;  %v3017_v1 = vpop.f32.mrb[34].mxu0 }
 0x611   :  { %v3018_v20 = vpop.f32.mrb[35].mxu0 }
 0x612   :  { %v2601_v16 = vadd.f32 %v3016_v26, %v2263_v30  ;;  %v3019_v9 = vadd.f32 %v3018_v20, %v3017_v1 }
 0x614   :  { %v2604_v36 = vadd.f32 %v3019_v9, %v2268_v13  ;;  %v2685_v3 = vmax.f32 %v2601_v16, 0.0 }
 0x616   :  { %v2686_v6 = vmax.f32 %v2604_v36, 0.0  ;;  %v3020_v17 = vpop.f32.mrb[36].mxu0 }
 0x617   :  { %v3021_v34 = vpop.f32.mrb[37].mxu0 }
 0x618   :  { %v3221_v57 = vpack.c.bf16 %v2686_v6, %v2685_v3  ;;  %v3022_v35 = vadd.f32 %v3021_v34, %v3020_v17  ;;  %v3023_v18 = vpop.f32.mrb[38].mxu0 }
 0x619   :  { %v3024_v39 = vpop.f32.mrb[39].mxu0 }
 0x61a   :  { %v2609_v40 = vadd.f32 %v3022_v35, %v4374_v23  ;;  %v3025_v4 = vadd.f32 %v3024_v39, %v3023_v18 }
 0x61c   :  { %v2612_v10 = vadd.f32 %v3025_v4, %v4376_v53  ;;  %v2687_v14 = vmax.f32 %v2609_v40, 0.0 }
 0x61e   :  { %v2688_v58 = vmax.f32 %v2612_v10, 0.0  ;;  %v3026_v42 = vpop.f32.mrb[40].mxu0 }
 0x61f   :  { %v3027_v45 = vpop.f32.mrb[41].mxu0 }
 0x620   :  { %v3028_v52 = vadd.f32 %v3027_v45, %v3026_v42  ;;  %v3029_v5 = vpop.f32.mrb[42].mxu0  ;;  %v3191_v21 = vpack.c.bf16 %v2688_v58, %v2687_v14 }
 0x621   :  { %v3030_v25 = vpop.f32.mrb[43].mxu0 }
 0x622   :  { %v2617_v0 = vadd.f32 %v3028_v52, %v4378_v8  ;;  %v3031_v15 = vadd.f32 %v3030_v25, %v3029_v5  ;;  %3192 = vmatprep.subr.bf16.mxu1 %v3191_v21 }
 0x623   :  { %3194 = vmatpush3.bf16.msra.mxu1 %v4407_v28 }
 0x624   :  { %v2620_v2 = vadd.f32 %v3031_v15, %v4380_v55  ;;  %v2689_v23 = vmax.f32 %v2617_v0, 0.0  ;;  %v2718_v55 = vrot.slane %v4395_v12, %v3513_v29 }
 0x626   :  { %v2690_v22 = vmax.f32 %v2620_v2, 0.0  ;;  %v3032_v19 = vpop.f32.mrb[44].mxu0 }
 0x627   :  { %v3033_v53 = vpop.f32.mrb[45].mxu0 }
 0x628   :  { %v3034_v60 = vadd.f32 %v3033_v53, %v3032_v19  ;;  %v3035_v49 = vpop.f32.mrb[46].mxu0  ;;  %v3195_v46 = vpack.c.bf16 %v2690_v22, %v2689_v23 }
 0x629   :  { %v3036_v54 = vpop.f32.mrb[47].mxu0 }
 0x62a   :  { %v2625_v59 = vadd.f32 %v3034_v60, %v4382_v62  ;;  %v3037_v56 = vadd.f32 %v3036_v54, %v3035_v49  ;;  %3196 = vmatprep.subr.bf16.mxu1 %v3195_v46  ;;  %v2708_v62 = vpop.permute.xlu1 %2707 }
 0x62b   :  { %3198 = vmatpush3.bf16.msra.mxu1 %v4413_v33  ;;  %v2713_v33 = vrot.slane %v2708_v62, %v3513_v29 }
 0x62c   :  { %v2628_v8 = vadd.f32 %v3037_v56, %v4384_v7  ;;  %v2691_v11 = vmax.f32 %v2625_v59, 0.0 }
 0x62e   :  { %v2692_v28 = vmax.f32 %v2628_v8, 0.0 }
 0x630   :  { %v3199_v31 = vpack.c.bf16 %v2692_v28, %v2691_v11 }
 0x632   :  { %3200 = vmatprep.subr.bf16.mxu1 %v3199_v31 }
 0x633   :  { %3202 = vmatpush3.bf16.msra.mxu1 %v4421_v44 }
 0x634   :  { %3204 = vmatprep.subr.bf16.mxu1 %v4409_v43 }
 0x637   :  { %3206 = vmatpush3.bf16.msra.mxu1 %v4427_v24 }
 0x638   :  { %3208 = vmatprep.subr.bf16.mxu1 %v4415_v37 }
 0x63b   :  { %3210 = vmatpush3.bf16.msra.mxu1 %v4433_v63 }
 0x63c   :  { %3212 = vmatprep.subr.bf16.mxu1 %v4423_v51 }
 0x63f   :  { %3214 = vmatpush3.bf16.msra.mxu1 %v4439_v47 }
 0x640   :  { %3216 = vmatprep.subr.bf16.mxu1 %v4429_v27 }
 0x643   :  { %3218 = vmatpush3.bf16.msra.mxu1 %v3217_v41 }
 0x644   :  { %3220 = vmatprep.subr.bf16.mxu1 %v4435_v50 }
 0x647   :  { %3222 = vmatpush3.bf16.msra.mxu1 %v3221_v57 }
 0x64a   :  { %2790 = vmatmul.mubr.f32.vlgmr.msra.gmra.mrb[56].mxu1 %v2718_v55 }
 0x71d   :  { %v3100_v7 = vpop.f32.mrb[56].mxu1 }
 0x71e   :  { %v3101_v43 = vpop.f32.mrb[57].mxu1 }
 0x71f   :  { %v3102_v37 = vadd.f32 %v3101_v43, %v3100_v7 }
 0x721   :  { %v2792_v44 = vadd.f32 %v3102_v37, %v2713_v33 }
 0x723   :  { %2795 = vst [vmem:[#allocation6] sm:$0x1] %v2792_v44 }
 0x724   :  { %3374 = shalt.err (!%p3371_p9)
}
 0x725   :  { %s3375_s9 = scalar_lea.hbm %s4486_s12, 16 }
 0x726   :  { %p3376_p10 = scmp.ne.s32.totalorder %s4486_s12, %s3375_s9  ;;  %p3379_p11 = scmp.lt.u32.totalorder %s3375_s9, %s4486_s12 }
 0x728   :  { %p3381_p12 = pnand %p3379_p11, %p3376_p10 }
 0x72a   :  { %3384 = shalt.err (!%p3381_p12)
}
 0x72b   :  { %2805 = dma.vmem_to_hbm [thread:$0]  %s2803_s25, 16, %s4486_s12, [#allocation4]  }
 0x72c   :  { %3387 = dma.done.wait [#allocation4], 16  }
 0x72d   :  { %3388 = vsyncadd [#allocation4], 4294967280 }
 0x72e   :  { %2809 = vsyncpa [#allocation4], 1 }
 0x72f   :  { %2810 = vsyncpa [#allocation5], 1 }

</bundles_post_ra>
